<compile_context>
chip_gen: v7x
topology: tpu7x:2x2x1
jax: 0.10.0
libtpu: 0.0.40
codegen_flags: <defaults>
</compile_context>

<pallas_src>
import functools

import jax
import jax.numpy as jnp
from jax.experimental import pallas as pl
from jax.experimental.pallas import tpu as pltpu


MATMUL_DTYPE = jnp.bfloat16   # MXU operand dtype; accumulation stays f32.


# ----------------------------- helpers -----------------------------

def _layernorm(x, gamma, beta, eps):
    # x: [N, D]; gamma/beta: [1, D]; normalize over lanes (last dim), f32 math.
    mu = jnp.mean(x, axis=-1, keepdims=True)
    var = jnp.mean(jnp.square(x - mu), axis=-1, keepdims=True)
    return (x - mu) * jax.lax.rsqrt(var + eps) * gamma + beta


def _full_spec(a):
    nd = a.ndim
    return pl.BlockSpec(a.shape, lambda: (0,) * nd)


# ----------------------------- Pallas kernels -----------------------------

def _embed_kernel(patches_ref, w_ref, posp_ref, cls_ref, pos0_ref, g_ref, b_ref,
                  patch_out_ref, cls_out_ref, *, eps):
    # patches: [B*NP, C*P*P] f32, w: [C*P*P, D] bf16, posp: [B*NP, D],
    # cls/pos0/g/b: [1, D].  Outputs: pre-LN'd patch tokens and CLS token.
    cdt = w_ref.dtype
    pe = jnp.dot(patches_ref[...].astype(cdt), w_ref[...],
                 preferred_element_type=jnp.float32)                # [B*NP, D]
    gamma = g_ref[...]
    beta = b_ref[...]
    patch_out_ref[...] = _layernorm(pe + posp_ref[...], gamma, beta, eps)
    cls_out_ref[...] = _layernorm(cls_ref[...] + pos0_ref[...], gamma, beta, eps)


def _tower_kernel(h0_ref, ln1g_ref, ln1b_ref, wqkv_ref, bqkv_ref,
                  wo_ref, bo_ref, ln2g_ref, ln2b_ref,
                  w1_ref, b1_ref, w2_ref, b2_ref,
                  out_ref, h_scr, *, num_batch, seq, num_heads, eps):
    # One grid step == one full CLIP encoder layer.  The running activation
    # h ([M, D] f32) stays resident in VMEM scratch across all L grid steps;
    # each layer's output is written once to block l of out ([L, M, D]).
    l = pl.program_id(0)
    M, D = h_scr.shape
    Dh = D // num_heads
    scale = Dh ** -0.5
    cdt = wqkv_ref.dtype

    @pl.when(l == 0)
    def _():
        h_scr[...] = h0_ref[...]

    x = h_scr[...]                                                  # [M, D] f32

    # ---- LN1 + fused QKV projection (bias folded before the one bf16 cast) ----
    hn = _layernorm(x, ln1g_ref[0], ln1b_ref[0], eps)
    qkv = (jnp.dot(hn.astype(cdt), wqkv_ref[0],
                   preferred_element_type=jnp.float32)
           + bqkv_ref[0]).astype(cdt)                               # [M, 3D] bf16

    # ---- multi-head self-attention, computed per image (no batch mask) ----
    # TODO(synk): at real head counts, use lane-dense multi-head blocks /
    # fori_loop instead of 32-lane per-head slices with a static unroll.
    ctx_rows = []
    for b in range(num_batch):          # static unroll (tiny B)
        r0 = b * seq
        head_ctx = []
        for hd in range(num_heads):     # static unroll (tiny H)
            lo = hd * Dh
            q_h = qkv[r0:r0 + seq, lo:lo + Dh]
            k_h = qkv[r0:r0 + seq, D + lo:D + lo + Dh]
            v_h = qkv[r0:r0 + seq, 2 * D + lo:2 * D + lo + Dh]
            # q @ k^T without materializing a transpose of k.
            s = jax.lax.dot_general(q_h, k_h, (((1,), (1,)), ((), ())),
                                    preferred_element_type=jnp.float32) * scale
            s = s - jnp.max(s, axis=-1, keepdims=True)
            p = jnp.exp(s)
            p = p * pl.reciprocal(jnp.sum(p, axis=-1, keepdims=True), approx=True)
            head_ctx.append(jnp.dot(p.astype(cdt), v_h,
                                    preferred_element_type=jnp.float32))
        ctx_rows.append(jnp.concatenate(head_ctx, axis=-1))         # [T, D]
    ctx = jnp.concatenate(ctx_rows, axis=0).astype(cdt)             # [M, D]

    # Single K=D out-projection (one MXU contraction instead of H small ones).
    attn = jnp.dot(ctx, wo_ref[0], preferred_element_type=jnp.float32) + bo_ref[0]
    h1 = x + attn                                                   # residual 1

    # ---- LN2 + MLP (quick_gelu, as in CLIP) + residual ----
    hn2 = _layernorm(h1, ln2g_ref[0], ln2b_ref[0], eps)
    m1 = jnp.dot(hn2.astype(cdt), w1_ref[0],
                 preferred_element_type=jnp.float32) + b1_ref[0]
    m1 = m1 * jax.nn.sigmoid(1.702 * m1)                            # quick_gelu
    h2 = h1 + jnp.dot(m1.astype(cdt), w2_ref[0],
                      preferred_element_type=jnp.float32) + b2_ref[0]

    h_scr[...] = h2            # activation stays in VMEM for the next layer
    out_ref[0] = h2            # hidden_states[l + 1]


# ----------------------------- Pallas wrappers -----------------------------

def pallas_embed(patches, w, pos_patch, cls, pos0, g, b, *, eps=1e-5):
    Mp = patches.shape[0]
    D = w.shape[1]
    args = (patches, w, pos_patch, cls, pos0, g, b)
    return pl.pallas_call(
        functools.partial(_embed_kernel, eps=eps),
        out_shape=(jax.ShapeDtypeStruct((Mp, D), jnp.float32),
                   jax.ShapeDtypeStruct((1, D), jnp.float32)),
        in_specs=[_full_spec(a) for a in args],
        out_specs=(pl.BlockSpec((Mp, D), lambda: (0, 0)),
                   pl.BlockSpec((1, D), lambda: (0, 0))),
    )(*args)


_WEIGHT_NAMES = ("ln1_g", "ln1_b", "wqkv", "bqkv", "wo", "bo",
                 "ln2_g", "ln2_b", "w1", "b1", "w2", "b2")


def pallas_vision_tower_layers(h0, sp, *, num_batch, seq, num_heads, eps=1e-5):
    """Run all L encoder layers in ONE grid-pipelined pallas_call.

    h0: [M, D] f32 encoder input; sp: dict of weights stacked over layers.
    Returns [L, M, D] f32 of per-layer hidden states.
    """
    M, D = h0.shape
    L = sp["wqkv"].shape[0]

    in_specs = [pl.BlockSpec((M, D), lambda l: (0, 0))]
    for n in _WEIGHT_NAMES:
        blk = (1,) + sp[n].shape[1:]
        in_specs.append(pl.BlockSpec(blk, lambda l: (l, 0, 0)))

    return pl.pallas_call(
        functools.partial(_tower_kernel, num_batch=num_batch, seq=seq,
                          num_heads=num_heads, eps=eps),
        out_shape=jax.ShapeDtypeStruct((L, M, D), jnp.float32),
        grid_spec=pltpu.PrefetchScalarGridSpec(
            num_scalar_prefetch=0,
            grid=(L,),
            in_specs=in_specs,
            out_specs=pl.BlockSpec((1, M, D), lambda l: (l, 0, 0)),
            scratch_shapes=[pltpu.VMEM((M, D), jnp.float32)]),
        compiler_params=pltpu.CompilerParams(
            dimension_semantics=("arbitrary",)),
    )(h0, *(sp[n] for n in _WEIGHT_NAMES))


# ----------------------------- Vision tower -----------------------------

class Cfg:
    image_size = 16
    patch_size = 8
    channels = 3
    hidden = 128      # multiple of 128 -> lane-dense kernel outputs
    heads = 4         # head_dim = 32
    mlp = 512
    layers = 3


def init_params(cfg, key):
    D, C, P, F, L = cfg.hidden, cfg.channels, cfg.patch_size, cfg.mlp, cfg.layers
    T = (cfg.image_size // P) ** 2 + 1
    K = C * P * P
    wdt = MATMUL_DTYPE
    s = 0.02

    def nrm(k, shape, dtype=jnp.float32):
        return (s * jax.random.normal(k, shape, dtype=jnp.float32)).astype(dtype)

    keys = jax.random.split(key, 7)
    return {
        # Patch-conv weight pre-flattened/transposed to [C*P*P, D] (hoisted).
        "patch_w": nrm(keys[0], (K, D), wdt),
        "cls": nrm(keys[1], (1, D)),
        "pos": nrm(keys[2], (T, D)),
        "pre_ln_g": jnp.ones((1, D), jnp.float32),
        "pre_ln_b": jnp.zeros((1, D), jnp.float32),
        # Per-layer weights stacked over the layer axis (hoisted, done once).
        "layers": {
            "ln1_g": jnp.ones((L, 1, D), jnp.float32),
            "ln1_b": jnp.zeros((L, 1, D), jnp.float32),
            "wqkv": nrm(keys[3], (L, D, 3 * D), wdt),   # [wq | wk | wv] fused
            "bqkv": jnp.zeros((L, 1, 3 * D), jnp.float32),
            "wo": nrm(keys[4], (L, D, D), wdt),
            "bo": jnp.zeros((L, 1, D), jnp.float32),
            "ln2_g": jnp.ones((L, 1, D), jnp.float32),
            "ln2_b": jnp.zeros((L, 1, D), jnp.float32),
            "w1": nrm(keys[5], (L, D, F), wdt),
            "b1": jnp.zeros((L, 1, F), jnp.float32),
            "w2": nrm(keys[6], (L, F, D), wdt),
            "b2": jnp.zeros((L, 1, D), jnp.float32),
        },
    }


def vision_tower_forward(x, params, cfg, vision_feature_layer=-2,
                         vision_feature_select_strategy="patch"):
    """Equivalent of VisionTower.forward(x, **kwargs)."""
    B, C, H, W = x.shape
    P, D = cfg.patch_size, cfg.hidden
    Hp, Wp = H // P, W // P
    num_patches = Hp * Wp
    T = num_patches + 1

    # im2col for the stride-P patch conv (one-time layout shuffle, XLA glue).
    patches = (x.reshape(B, C, Hp, P, Wp, P)
                .transpose(0, 2, 4, 1, 3, 5)
                .reshape(B * num_patches, C * P * P))

    pos = params["pos"]
    pos_patch = jnp.tile(pos[1:], (B, 1))                     # [B*NP, D]

    # patch-embed + pos-embed + pre-LN fused into one batch-vectorized kernel.
    patch_tok, cls_tok = pallas_embed(
        patches, params["patch_w"], pos_patch, params["cls"], pos[0:1],
        params["pre_ln_g"], params["pre_ln_b"])

    # Interleave CLS + patch tokens per image (cheap one-time XLA glue).
    h0 = jnp.concatenate(
        [jnp.broadcast_to(cls_tok[None], (B, 1, D)),
         patch_tok.reshape(B, num_patches, D)], axis=1).reshape(B * T, D)

    # All encoder layers in one grid-pipelined pallas_call.
    layer_outs = pallas_vision_tower_layers(
        h0, params["layers"], num_batch=B, seq=T, num_heads=cfg.heads)

    hidden_states = [h0] + [layer_outs[i] for i in range(layer_outs.shape[0])]
    feats = hidden_states[vision_feature_layer].reshape(B, T, D)
    if vision_feature_select_strategy == "patch":
        feats = feats[:, 1:]                  # drop CLS token
    elif vision_feature_select_strategy == "cls_patch":
        pass
    else:
        raise ValueError(
            f"Unexpected select feature: {vision_feature_select_strategy}")
    return feats


# ----------------------------- main -----------------------------

if __name__ == "__main__":
    cfg = Cfg()
    key = jax.random.PRNGKey(0)
    k_x, k_p = jax.random.split(key)

    x = jax.random.normal(
        k_x, (2, cfg.channels, cfg.image_size, cfg.image_size), dtype=jnp.float32)
    params = init_params(cfg, k_p)

    fwd = jax.jit(lambda xx, pp: vision_tower_forward(
        xx, pp, cfg, vision_feature_layer=-2,
        vision_feature_select_strategy="patch"))
    feats = jax.block_until_ready(fwd(x, params))

    num_patches = (cfg.image_size // cfg.patch_size) ** 2
    assert feats.shape == (2, num_patches, cfg.hidden), feats.shape
    assert feats.dtype == jnp.float32
    assert bool(jnp.all(jnp.isfinite(feats)))
    print("KERNEL_OK")
</pallas_src>

<mosaic_0001>
module attributes {stable_mosaic.version = 11 : i64} {
  func.func @_embed_kernel(%arg0: memref<8x192xf32, #tpu.memory_space<vmem>>, %arg1: memref<192x128xbf16, #tpu.memory_space<vmem>>, %arg2: memref<8x128xf32, #tpu.memory_space<vmem>>, %arg3: memref<1x128xf32, #tpu.memory_space<vmem>>, %arg4: memref<1x128xf32, #tpu.memory_space<vmem>>, %arg5: memref<1x128xf32, #tpu.memory_space<vmem>>, %arg6: memref<1x128xf32, #tpu.memory_space<vmem>>, %arg7: memref<8x128xf32, #tpu.memory_space<vmem>>, %arg8: memref<1x128xf32, #tpu.memory_space<vmem>>) attributes {dimension_semantics = [], scalar_prefetch = 0 : i64, scratch_operands = 0 : i64, tpu.core_type = #tpu.core_type<tc>} {
    %c0 = arith.constant 0 : index
    %c0_0 = arith.constant 0 : index
    %0 = vector.load %arg0[%c0, %c0_0] : memref<8x192xf32, #tpu.memory_space<vmem>>, vector<8x192xf32>
    %1 = arith.truncf %0 : vector<8x192xf32> to vector<8x192xbf16>
    %c0_1 = arith.constant 0 : index
    %c0_2 = arith.constant 0 : index
    %2 = vector.load %arg1[%c0_1, %c0_2] : memref<192x128xbf16, #tpu.memory_space<vmem>>, vector<192x128xbf16>
    %cst = arith.constant dense<0.000000e+00> : vector<8x128xf32>
    %3 = tpu.matmul %1, %2, %cst {dimension_numbers = #tpu.dot_dimension_numbers<[1], [0], [0], [1], [0, 0, 1, 1], [], []>} : vector<8x192xbf16>, vector<192x128xbf16>, vector<8x128xf32> -> vector<8x128xf32>
    %c0_3 = arith.constant 0 : index
    %c0_4 = arith.constant 0 : index
    %4 = vector.load %arg5[%c0_3, %c0_4] : memref<1x128xf32, #tpu.memory_space<vmem>>, vector<1x128xf32>
    %c0_5 = arith.constant 0 : index
    %c0_6 = arith.constant 0 : index
    %5 = vector.load %arg6[%c0_5, %c0_6] : memref<1x128xf32, #tpu.memory_space<vmem>>, vector<1x128xf32>
    %c0_7 = arith.constant 0 : index
    %c0_8 = arith.constant 0 : index
    %6 = vector.load %arg2[%c0_7, %c0_8] : memref<8x128xf32, #tpu.memory_space<vmem>>, vector<8x128xf32>
    %7 = arith.addf %3, %6 : vector<8x128xf32>
    %cst_9 = arith.constant dense<0.000000e+00> : vector<8xf32>
    %8 = vector.multi_reduction <add>, %7, %cst_9 [1] : vector<8x128xf32> to vector<8xf32>
    %9 = vector.shape_cast %8 : vector<8xf32> to vector<8x1xf32>
    %cst_10 = arith.constant 1.280000e+02 : f32
    %10 = vector.broadcast %cst_10 : f32 to vector<8x1xf32>
    %11 = arith.divf %9, %10 : vector<8x1xf32>
    %12 = vector.broadcast %11 : vector<8x1xf32> to vector<8x128xf32>
    %13 = arith.subf %7, %12 : vector<8x128xf32>
    %14 = arith.mulf %13, %13 : vector<8x128xf32>
    %cst_11 = arith.constant dense<0.000000e+00> : vector<8xf32>
    %15 = vector.multi_reduction <add>, %14, %cst_11 [1] : vector<8x128xf32> to vector<8xf32>
    %16 = vector.shape_cast %15 : vector<8xf32> to vector<8x1xf32>
    %cst_12 = arith.constant 1.280000e+02 : f32
    %17 = vector.broadcast %cst_12 : f32 to vector<8x1xf32>
    %18 = arith.divf %16, %17 : vector<8x1xf32>
    %19 = vector.broadcast %11 : vector<8x1xf32> to vector<8x128xf32>
    %20 = arith.subf %7, %19 : vector<8x128xf32>
    %cst_13 = arith.constant 9.99999974E-6 : f32
    %21 = vector.broadcast %cst_13 : f32 to vector<8x1xf32>
    %22 = arith.addf %18, %21 : vector<8x1xf32>
    %23 = math.rsqrt %22 : vector<8x1xf32>
    %24 = vector.broadcast %23 : vector<8x1xf32> to vector<8x128xf32>
    %25 = arith.mulf %20, %24 : vector<8x128xf32>
    %26 = vector.broadcast %4 : vector<1x128xf32> to vector<8x128xf32>
    %27 = arith.mulf %25, %26 : vector<8x128xf32>
    %28 = vector.broadcast %5 : vector<1x128xf32> to vector<8x128xf32>
    %29 = arith.addf %27, %28 : vector<8x128xf32>
    %c0_14 = arith.constant 0 : index
    %c0_15 = arith.constant 0 : index
    %30 = vector.load %arg7[%c0_14, %c0_15] : memref<8x128xf32, #tpu.memory_space<vmem>>, vector<8x128xf32>
    tpu.vector_store %arg7[%c0_14, %c0_15], %29 {strides = array<i32>} : memref<8x128xf32, #tpu.memory_space<vmem>>, vector<8x128xf32>,
    %c0_16 = arith.constant 0 : index
    %c0_17 = arith.constant 0 : index
    %31 = vector.load %arg3[%c0_16, %c0_17] : memref<1x128xf32, #tpu.memory_space<vmem>>, vector<1x128xf32>
    %c0_18 = arith.constant 0 : index
    %c0_19 = arith.constant 0 : index
    %32 = vector.load %arg4[%c0_18, %c0_19] : memref<1x128xf32, #tpu.memory_space<vmem>>, vector<1x128xf32>
    %33 = arith.addf %31, %32 : vector<1x128xf32>
    %cst_20 = arith.constant dense<0.000000e+00> : vector<1xf32>
    %34 = vector.multi_reduction <add>, %33, %cst_20 [1] : vector<1x128xf32> to vector<1xf32>
    %35 = vector.shape_cast %34 : vector<1xf32> to vector<1x1xf32>
    %cst_21 = arith.constant 1.280000e+02 : f32
    %36 = vector.broadcast %cst_21 : f32 to vector<1x1xf32>
    %37 = arith.divf %35, %36 : vector<1x1xf32>
    %38 = vector.broadcast %37 : vector<1x1xf32> to vector<1x128xf32>
    %39 = arith.subf %33, %38 : vector<1x128xf32>
    %40 = arith.mulf %39, %39 : vector<1x128xf32>
    %cst_22 = arith.constant dense<0.000000e+00> : vector<1xf32>
    %41 = vector.multi_reduction <add>, %40, %cst_22 [1] : vector<1x128xf32> to vector<1xf32>
    %42 = vector.shape_cast %41 : vector<1xf32> to vector<1x1xf32>
    %cst_23 = arith.constant 1.280000e+02 : f32
    %43 = vector.broadcast %cst_23 : f32 to vector<1x1xf32>
    %44 = arith.divf %42, %43 : vector<1x1xf32>
    %45 = vector.broadcast %37 : vector<1x1xf32> to vector<1x128xf32>
    %46 = arith.subf %33, %45 : vector<1x128xf32>
    %cst_24 = arith.constant 9.99999974E-6 : f32
    %47 = vector.broadcast %cst_24 : f32 to vector<1x1xf32>
    %48 = arith.addf %44, %47 : vector<1x1xf32>
    %49 = math.rsqrt %48 : vector<1x1xf32>
    %50 = vector.broadcast %49 : vector<1x1xf32> to vector<1x128xf32>
    %51 = arith.mulf %46, %50 : vector<1x128xf32>
    %52 = arith.mulf %51, %4 : vector<1x128xf32>
    %53 = arith.addf %52, %5 : vector<1x128xf32>
    %c0_25 = arith.constant 0 : index
    %c0_26 = arith.constant 0 : index
    %54 = vector.load %arg8[%c0_25, %c0_26] : memref<1x128xf32, #tpu.memory_space<vmem>>, vector<1x128xf32>
    tpu.vector_store %arg8[%c0_25, %c0_26], %53 {strides = array<i32>} : memref<1x128xf32, #tpu.memory_space<vmem>>, vector<1x128xf32>,
    return
  }
}

module attributes {stable_mosaic.version = 11 : i64} {
  func.func @_tower_kernel(%arg0: i32, %arg1: memref<10x128xf32, #tpu.memory_space<vmem>>, %arg2: memref<1x1x128xf32, #tpu.memory_space<vmem>>, %arg3: memref<1x1x128xf32, #tpu.memory_space<vmem>>, %arg4: memref<1x128x384xbf16, #tpu.memory_space<vmem>>, %arg5: memref<1x1x384xf32, #tpu.memory_space<vmem>>, %arg6: memref<1x128x128xbf16, #tpu.memory_space<vmem>>, %arg7: memref<1x1x128xf32, #tpu.memory_space<vmem>>, %arg8: memref<1x1x128xf32, #tpu.memory_space<vmem>>, %arg9: memref<1x1x128xf32, #tpu.memory_space<vmem>>, %arg10: memref<1x128x512xbf16, #tpu.memory_space<vmem>>, %arg11: memref<1x1x512xf32, #tpu.memory_space<vmem>>, %arg12: memref<1x512x128xbf16, #tpu.memory_space<vmem>>, %arg13: memref<1x1x128xf32, #tpu.memory_space<vmem>>, %arg14: memref<1x10x128xf32, #tpu.memory_space<vmem>>, %arg15: memref<10x128xf32, #tpu.memory_space<vmem>>) attributes {dimension_semantics = [#tpu.dimension_semantics<arbitrary>], iteration_bounds = array<i64: 3>, scalar_prefetch = 0 : i64, scratch_operands = 1 : i64, tpu.core_type = #tpu.core_type<tc>, window_params = [{pipeline_mode = #tpu.pipeline_mode<synchronous>, transform_indices = @transform_0, window_bounds = array<i64: 10, 128>}, {transform_indices = @transform_1, window_bounds = array<i64: 1, 1, 128>}, {transform_indices = @transform_2, window_bounds = array<i64: 1, 1, 128>}, {transform_indices = @transform_3, window_bounds = array<i64: 1, 128, 384>}, {transform_indices = @transform_4, window_bounds = array<i64: 1, 1, 384>}, {transform_indices = @transform_5, window_bounds = array<i64: 1, 128, 128>}, {transform_indices = @transform_6, window_bounds = array<i64: 1, 1, 128>}, {transform_indices = @transform_7, window_bounds = array<i64: 1, 1, 128>}, {transform_indices = @transform_8, window_bounds = array<i64: 1, 1, 128>}, {transform_indices = @transform_9, window_bounds = array<i64: 1, 128, 512>}, {transform_indices = @transform_10, window_bounds = array<i64: 1, 1, 512>}, {transform_indices = @transform_11, window_bounds = array<i64: 1, 512, 128>}, {transform_indices = @transform_12, window_bounds = array<i64: 1, 1, 128>}, {transform_indices = @transform_13, window_bounds = array<i64: 1, 10, 128>}]} {
    %c0_i32 = arith.constant 0 : i32
    %0 = arith.cmpi eq, %arg0, %c0_i32 : i32
    %1 = arith.extui %0 : i1 to i32
    %c0_i32_0 = arith.constant 0 : i32
    %2 = arith.cmpi ne, %1, %c0_i32_0 : i32
    scf.if %2 {
      %c0_98 = arith.constant 0 : index
      %c0_99 = arith.constant 0 : index
      %250 = vector.load %arg1[%c0_98, %c0_99] : memref<10x128xf32, #tpu.memory_space<vmem>>, vector<10x128xf32>
      %c0_100 = arith.constant 0 : index
      %c0_101 = arith.constant 0 : index
      %251 = vector.load %arg15[%c0_100, %c0_101] : memref<10x128xf32, #tpu.memory_space<vmem>>, vector<10x128xf32>
      tpu.vector_store %arg15[%c0_100, %c0_101], %250 {strides = array<i32>} : memref<10x128xf32, #tpu.memory_space<vmem>>, vector<10x128xf32>,
    } else {
    }
    %c0 = arith.constant 0 : index
    %c0_1 = arith.constant 0 : index
    %3 = vector.load %arg15[%c0, %c0_1] : memref<10x128xf32, #tpu.memory_space<vmem>>, vector<10x128xf32>
    %c0_2 = arith.constant 0 : index
    %c0_3 = arith.constant 0 : index
    %c0_4 = arith.constant 0 : index
    %4 = vector.load %arg2[%c0_2, %c0_3, %c0_4] : memref<1x1x128xf32, #tpu.memory_space<vmem>>, vector<1x1x128xf32>
    %5 = vector.shape_cast %4 : vector<1x1x128xf32> to vector<1x128xf32>
    %c0_5 = arith.constant 0 : index
    %c0_6 = arith.constant 0 : index
    %c0_7 = arith.constant 0 : index
    %6 = vector.load %arg3[%c0_5, %c0_6, %c0_7] : memref<1x1x128xf32, #tpu.memory_space<vmem>>, vector<1x1x128xf32>
    %7 = vector.shape_cast %6 : vector<1x1x128xf32> to vector<1x128xf32>
    %cst = arith.constant dense<0.000000e+00> : vector<10xf32>
    %8 = vector.multi_reduction <add>, %3, %cst [1] : vector<10x128xf32> to vector<10xf32>
    %9 = vector.shape_cast %8 : vector<10xf32> to vector<10x1xf32>
    %cst_8 = arith.constant 1.280000e+02 : f32
    %10 = vector.broadcast %cst_8 : f32 to vector<10x1xf32>
    %11 = arith.divf %9, %10 : vector<10x1xf32>
    %12 = vector.broadcast %11 : vector<10x1xf32> to vector<10x128xf32>
    %13 = arith.subf %3, %12 : vector<10x128xf32>
    %14 = arith.mulf %13, %13 : vector<10x128xf32>
    %cst_9 = arith.constant dense<0.000000e+00> : vector<10xf32>
    %15 = vector.multi_reduction <add>, %14, %cst_9 [1] : vector<10x128xf32> to vector<10xf32>
    %16 = vector.shape_cast %15 : vector<10xf32> to vector<10x1xf32>
    %cst_10 = arith.constant 1.280000e+02 : f32
    %17 = vector.broadcast %cst_10 : f32 to vector<10x1xf32>
    %18 = arith.divf %16, %17 : vector<10x1xf32>
    %19 = vector.broadcast %11 : vector<10x1xf32> to vector<10x128xf32>
    %20 = arith.subf %3, %19 : vector<10x128xf32>
    %cst_11 = arith.constant 9.99999974E-6 : f32
    %21 = vector.broadcast %cst_11 : f32 to vector<10x1xf32>
    %22 = arith.addf %18, %21 : vector<10x1xf32>
    %23 = math.rsqrt %22 : vector<10x1xf32>
    %24 = vector.broadcast %23 : vector<10x1xf32> to vector<10x128xf32>
    %25 = arith.mulf %20, %24 : vector<10x128xf32>
    %26 = vector.broadcast %5 : vector<1x128xf32> to vector<10x128xf32>
    %27 = arith.mulf %25, %26 : vector<10x128xf32>
    %28 = vector.broadcast %7 : vector<1x128xf32> to vector<10x128xf32>
    %29 = arith.addf %27, %28 : vector<10x128xf32>
    %30 = arith.truncf %29 : vector<10x128xf32> to vector<10x128xbf16>
    %c0_12 = arith.constant 0 : index
    %c0_13 = arith.constant 0 : index
    %c0_14 = arith.constant 0 : index
    %31 = vector.load %arg4[%c0_12, %c0_13, %c0_14] : memref<1x128x384xbf16, #tpu.memory_space<vmem>>, vector<1x128x384xbf16>
    %32 = vector.shape_cast %31 : vector<1x128x384xbf16> to vector<128x384xbf16>
    %cst_15 = arith.constant dense<0.000000e+00> : vector<10x384xf32>
    %33 = tpu.matmul %30, %32, %cst_15 {dimension_numbers = #tpu.dot_dimension_numbers<[1], [0], [0], [1], [0, 0, 1, 1], [], []>} : vector<10x128xbf16>, vector<128x384xbf16>, vector<10x384xf32> -> vector<10x384xf32>
    %c0_16 = arith.constant 0 : index
    %c0_17 = arith.constant 0 : index
    %c0_18 = arith.constant 0 : index
    %34 = vector.load %arg5[%c0_16, %c0_17, %c0_18] : memref<1x1x384xf32, #tpu.memory_space<vmem>>, vector<1x1x384xf32>
    %35 = vector.shape_cast %34 : vector<1x1x384xf32> to vector<1x384xf32>
    %36 = vector.broadcast %35 : vector<1x384xf32> to vector<10x384xf32>
    %37 = arith.addf %33, %36 : vector<10x384xf32>
    %38 = arith.truncf %37 : vector<10x384xf32> to vector<10x384xbf16>
    %39 = vector.extract_strided_slice %38 {offsets = [0, 0], sizes = [5, 32], strides = [1, 1]} : vector<10x384xbf16> to vector<5x32xbf16>
    %40 = vector.extract_strided_slice %38 {offsets = [0, 128], sizes = [5, 32], strides = [1, 1]} : vector<10x384xbf16> to vector<5x32xbf16>
    %41 = vector.extract_strided_slice %38 {offsets = [0, 256], sizes = [5, 32], strides = [1, 1]} : vector<10x384xbf16> to vector<5x32xbf16>
    %cst_19 = arith.constant dense<0.000000e+00> : vector<5x5xf32>
    %42 = tpu.matmul %39, %40, %cst_19 {dimension_numbers = #tpu.dot_dimension_numbers<[1], [1], [0], [0], [0, 0, 1, 0], [], []>} : vector<5x32xbf16>, vector<5x32xbf16>, vector<5x5xf32> -> vector<5x5xf32>
    %cst_20 = arith.constant 0.176776692 : f32
    %43 = vector.broadcast %cst_20 : f32 to vector<5x5xf32>
    %44 = arith.mulf %42, %43 : vector<5x5xf32>
    %cst_21 = arith.constant dense<0xFF800000> : vector<5xf32>
    %45 = vector.multi_reduction <maximumf>, %44, %cst_21 [1] : vector<5x5xf32> to vector<5xf32>
    %46 = vector.shape_cast %45 : vector<5xf32> to vector<5x1xf32>
    %47 = vector.broadcast %46 : vector<5x1xf32> to vector<5x5xf32>
    %48 = arith.subf %44, %47 : vector<5x5xf32>
    %49 = math.exp %48 : vector<5x5xf32>
    %cst_22 = arith.constant dense<0.000000e+00> : vector<5xf32>
    %50 = vector.multi_reduction <add>, %49, %cst_22 [1] : vector<5x5xf32> to vector<5xf32>
    %51 = vector.shape_cast %50 : vector<5xf32> to vector<5x1xf32>
    %52 = tpu.reciprocal %51 {approx = true} : vector<5x1xf32> -> vector<5x1xf32>
    %53 = vector.broadcast %52 : vector<5x1xf32> to vector<5x5xf32>
    %54 = arith.mulf %49, %53 : vector<5x5xf32>
    %55 = arith.truncf %54 : vector<5x5xf32> to vector<5x5xbf16>
    %cst_23 = arith.constant dense<0.000000e+00> : vector<5x32xf32>
    %56 = tpu.matmul %55, %41, %cst_23 {dimension_numbers = #tpu.dot_dimension_numbers<[1], [0], [0], [1], [0, 0, 1, 1], [], []>} : vector<5x5xbf16>, vector<5x32xbf16>, vector<5x32xf32> -> vector<5x32xf32>
    %57 = vector.extract_strided_slice %38 {offsets = [0, 32], sizes = [5, 32], strides = [1, 1]} : vector<10x384xbf16> to vector<5x32xbf16>
    %58 = vector.extract_strided_slice %38 {offsets = [0, 160], sizes = [5, 32], strides = [1, 1]} : vector<10x384xbf16> to vector<5x32xbf16>
    %59 = vector.extract_strided_slice %38 {offsets = [0, 288], sizes = [5, 32], strides = [1, 1]} : vector<10x384xbf16> to vector<5x32xbf16>
    %cst_24 = arith.constant dense<0.000000e+00> : vector<5x5xf32>
    %60 = tpu.matmul %57, %58, %cst_24 {dimension_numbers = #tpu.dot_dimension_numbers<[1], [1], [0], [0], [0, 0, 1, 0], [], []>} : vector<5x32xbf16>, vector<5x32xbf16>, vector<5x5xf32> -> vector<5x5xf32>
    %cst_25 = arith.constant 0.176776692 : f32
    %61 = vector.broadcast %cst_25 : f32 to vector<5x5xf32>
    %62 = arith.mulf %60, %61 : vector<5x5xf32>
    %cst_26 = arith.constant dense<0xFF800000> : vector<5xf32>
    %63 = vector.multi_reduction <maximumf>, %62, %cst_26 [1] : vector<5x5xf32> to vector<5xf32>
    %64 = vector.shape_cast %63 : vector<5xf32> to vector<5x1xf32>
    %65 = vector.broadcast %64 : vector<5x1xf32> to vector<5x5xf32>
    %66 = arith.subf %62, %65 : vector<5x5xf32>
    %67 = math.exp %66 : vector<5x5xf32>
    %cst_27 = arith.constant dense<0.000000e+00> : vector<5xf32>
    %68 = vector.multi_reduction <add>, %67, %cst_27 [1] : vector<5x5xf32> to vector<5xf32>
    %69 = vector.shape_cast %68 : vector<5xf32> to vector<5x1xf32>
    %70 = tpu.reciprocal %69 {approx = true} : vector<5x1xf32> -> vector<5x1xf32>
    %71 = vector.broadcast %70 : vector<5x1xf32> to vector<5x5xf32>
    %72 = arith.mulf %67, %71 : vector<5x5xf32>
    %73 = arith.truncf %72 : vector<5x5xf32> to vector<5x5xbf16>
    %cst_28 = arith.constant dense<0.000000e+00> : vector<5x32xf32>
    %74 = tpu.matmul %73, %59, %cst_28 {dimension_numbers = #tpu.dot_dimension_numbers<[1], [0], [0], [1], [0, 0, 1, 1], [], []>} : vector<5x5xbf16>, vector<5x32xbf16>, vector<5x32xf32> -> vector<5x32xf32>
    %75 = vector.extract_strided_slice %38 {offsets = [0, 64], sizes = [5, 32], strides = [1, 1]} : vector<10x384xbf16> to vector<5x32xbf16>
    %76 = vector.extract_strided_slice %38 {offsets = [0, 192], sizes = [5, 32], strides = [1, 1]} : vector<10x384xbf16> to vector<5x32xbf16>
    %77 = vector.extract_strided_slice %38 {offsets = [0, 320], sizes = [5, 32], strides = [1, 1]} : vector<10x384xbf16> to vector<5x32xbf16>
    %cst_29 = arith.constant dense<0.000000e+00> : vector<5x5xf32>
    %78 = tpu.matmul %75, %76, %cst_29 {dimension_numbers = #tpu.dot_dimension_numbers<[1], [1], [0], [0], [0, 0, 1, 0], [], []>} : vector<5x32xbf16>, vector<5x32xbf16>, vector<5x5xf32> -> vector<5x5xf32>
    %cst_30 = arith.constant 0.176776692 : f32
    %79 = vector.broadcast %cst_30 : f32 to vector<5x5xf32>
    %80 = arith.mulf %78, %79 : vector<5x5xf32>
    %cst_31 = arith.constant dense<0xFF800000> : vector<5xf32>
    %81 = vector.multi_reduction <maximumf>, %80, %cst_31 [1] : vector<5x5xf32> to vector<5xf32>
    %82 = vector.shape_cast %81 : vector<5xf32> to vector<5x1xf32>
    %83 = vector.broadcast %82 : vector<5x1xf32> to vector<5x5xf32>
    %84 = arith.subf %80, %83 : vector<5x5xf32>
    %85 = math.exp %84 : vector<5x5xf32>
    %cst_32 = arith.constant dense<0.000000e+00> : vector<5xf32>
    %86 = vector.multi_reduction <add>, %85, %cst_32 [1] : vector<5x5xf32> to vector<5xf32>
    %87 = vector.shape_cast %86 : vector<5xf32> to vector<5x1xf32>
    %88 = tpu.reciprocal %87 {approx = true} : vector<5x1xf32> -> vector<5x1xf32>
    %89 = vector.broadcast %88 : vector<5x1xf32> to vector<5x5xf32>
    %90 = arith.mulf %85, %89 : vector<5x5xf32>
    %91 = arith.truncf %90 : vector<5x5xf32> to vector<5x5xbf16>
    %cst_33 = arith.constant dense<0.000000e+00> : vector<5x32xf32>
    %92 = tpu.matmul %91, %77, %cst_33 {dimension_numbers = #tpu.dot_dimension_numbers<[1], [0], [0], [1], [0, 0, 1, 1], [], []>} : vector<5x5xbf16>, vector<5x32xbf16>, vector<5x32xf32> -> vector<5x32xf32>
    %93 = vector.extract_strided_slice %38 {offsets = [0, 96], sizes = [5, 32], strides = [1, 1]} : vector<10x384xbf16> to vector<5x32xbf16>
    %94 = vector.extract_strided_slice %38 {offsets = [0, 224], sizes = [5, 32], strides = [1, 1]} : vector<10x384xbf16> to vector<5x32xbf16>
    %95 = vector.extract_strided_slice %38 {offsets = [0, 352], sizes = [5, 32], strides = [1, 1]} : vector<10x384xbf16> to vector<5x32xbf16>
    %cst_34 = arith.constant dense<0.000000e+00> : vector<5x5xf32>
    %96 = tpu.matmul %93, %94, %cst_34 {dimension_numbers = #tpu.dot_dimension_numbers<[1], [1], [0], [0], [0, 0, 1, 0], [], []>} : vector<5x32xbf16>, vector<5x32xbf16>, vector<5x5xf32> -> vector<5x5xf32>
    %cst_35 = arith.constant 0.176776692 : f32
    %97 = vector.broadcast %cst_35 : f32 to vector<5x5xf32>
    %98 = arith.mulf %96, %97 : vector<5x5xf32>
    %cst_36 = arith.constant dense<0xFF800000> : vector<5xf32>
    %99 = vector.multi_reduction <maximumf>, %98, %cst_36 [1] : vector<5x5xf32> to vector<5xf32>
    %100 = vector.shape_cast %99 : vector<5xf32> to vector<5x1xf32>
    %101 = vector.broadcast %100 : vector<5x1xf32> to vector<5x5xf32>
    %102 = arith.subf %98, %101 : vector<5x5xf32>
    %103 = math.exp %102 : vector<5x5xf32>
    %cst_37 = arith.constant dense<0.000000e+00> : vector<5xf32>
    %104 = vector.multi_reduction <add>, %103, %cst_37 [1] : vector<5x5xf32> to vector<5xf32>
    %105 = vector.shape_cast %104 : vector<5xf32> to vector<5x1xf32>
    %106 = tpu.reciprocal %105 {approx = true} : vector<5x1xf32> -> vector<5x1xf32>
    %107 = vector.broadcast %106 : vector<5x1xf32> to vector<5x5xf32>
    %108 = arith.mulf %103, %107 : vector<5x5xf32>
    %109 = arith.truncf %108 : vector<5x5xf32> to vector<5x5xbf16>
    %cst_38 = arith.constant dense<0.000000e+00> : vector<5x32xf32>
    %110 = tpu.matmul %109, %95, %cst_38 {dimension_numbers = #tpu.dot_dimension_numbers<[1], [0], [0], [1], [0, 0, 1, 1], [], []>} : vector<5x5xbf16>, vector<5x32xbf16>, vector<5x32xf32> -> vector<5x32xf32>
    %111 = tpu.concatenate %56, %74, %92, %110 in 1 : vector<5x32xf32>, vector<5x32xf32>, vector<5x32xf32>, vector<5x32xf32> -> vector<5x128xf32>
    %112 = vector.extract_strided_slice %38 {offsets = [5, 0], sizes = [5, 32], strides = [1, 1]} : vector<10x384xbf16> to vector<5x32xbf16>
    %113 = vector.extract_strided_slice %38 {offsets = [5, 128], sizes = [5, 32], strides = [1, 1]} : vector<10x384xbf16> to vector<5x32xbf16>
    %114 = vector.extract_strided_slice %38 {offsets = [5, 256], sizes = [5, 32], strides = [1, 1]} : vector<10x384xbf16> to vector<5x32xbf16>
    %cst_39 = arith.constant dense<0.000000e+00> : vector<5x5xf32>
    %115 = tpu.matmul %112, %113, %cst_39 {dimension_numbers = #tpu.dot_dimension_numbers<[1], [1], [0], [0], [0, 0, 1, 0], [], []>} : vector<5x32xbf16>, vector<5x32xbf16>, vector<5x5xf32> -> vector<5x5xf32>
    %cst_40 = arith.constant 0.176776692 : f32
    %116 = vector.broadcast %cst_40 : f32 to vector<5x5xf32>
    %117 = arith.mulf %115, %116 : vector<5x5xf32>
    %cst_41 = arith.constant dense<0xFF800000> : vector<5xf32>
    %118 = vector.multi_reduction <maximumf>, %117, %cst_41 [1] : vector<5x5xf32> to vector<5xf32>
    %119 = vector.shape_cast %118 : vector<5xf32> to vector<5x1xf32>
    %120 = vector.broadcast %119 : vector<5x1xf32> to vector<5x5xf32>
    %121 = arith.subf %117, %120 : vector<5x5xf32>
    %122 = math.exp %121 : vector<5x5xf32>
    %cst_42 = arith.constant dense<0.000000e+00> : vector<5xf32>
    %123 = vector.multi_reduction <add>, %122, %cst_42 [1] : vector<5x5xf32> to vector<5xf32>
    %124 = vector.shape_cast %123 : vector<5xf32> to vector<5x1xf32>
    %125 = tpu.reciprocal %124 {approx = true} : vector<5x1xf32> -> vector<5x1xf32>
    %126 = vector.broadcast %125 : vector<5x1xf32> to vector<5x5xf32>
    %127 = arith.mulf %122, %126 : vector<5x5xf32>
    %128 = arith.truncf %127 : vector<5x5xf32> to vector<5x5xbf16>
    %cst_43 = arith.constant dense<0.000000e+00> : vector<5x32xf32>
    %129 = tpu.matmul %128, %114, %cst_43 {dimension_numbers = #tpu.dot_dimension_numbers<[1], [0], [0], [1], [0, 0, 1, 1], [], []>} : vector<5x5xbf16>, vector<5x32xbf16>, vector<5x32xf32> -> vector<5x32xf32>
    %130 = vector.extract_strided_slice %38 {offsets = [5, 32], sizes = [5, 32], strides = [1, 1]} : vector<10x384xbf16> to vector<5x32xbf16>
    %131 = vector.extract_strided_slice %38 {offsets = [5, 160], sizes = [5, 32], strides = [1, 1]} : vector<10x384xbf16> to vector<5x32xbf16>
    %132 = vector.extract_strided_slice %38 {offsets = [5, 288], sizes = [5, 32], strides = [1, 1]} : vector<10x384xbf16> to vector<5x32xbf16>
    %cst_44 = arith.constant dense<0.000000e+00> : vector<5x5xf32>
    %133 = tpu.matmul %130, %131, %cst_44 {dimension_numbers = #tpu.dot_dimension_numbers<[1], [1], [0], [0], [0, 0, 1, 0], [], []>} : vector<5x32xbf16>, vector<5x32xbf16>, vector<5x5xf32> -> vector<5x5xf32>
    %cst_45 = arith.constant 0.176776692 : f32
    %134 = vector.broadcast %cst_45 : f32 to vector<5x5xf32>
    %135 = arith.mulf %133, %134 : vector<5x5xf32>
    %cst_46 = arith.constant dense<0xFF800000> : vector<5xf32>
    %136 = vector.multi_reduction <maximumf>, %135, %cst_46 [1] : vector<5x5xf32> to vector<5xf32>
    %137 = vector.shape_cast %136 : vector<5xf32> to vector<5x1xf32>
    %138 = vector.broadcast %137 : vector<5x1xf32> to vector<5x5xf32>
    %139 = arith.subf %135, %138 : vector<5x5xf32>
    %140 = math.exp %139 : vector<5x5xf32>
    %cst_47 = arith.constant dense<0.000000e+00> : vector<5xf32>
    %141 = vector.multi_reduction <add>, %140, %cst_47 [1] : vector<5x5xf32> to vector<5xf32>
    %142 = vector.shape_cast %141 : vector<5xf32> to vector<5x1xf32>
    %143 = tpu.reciprocal %142 {approx = true} : vector<5x1xf32> -> vector<5x1xf32>
    %144 = vector.broadcast %143 : vector<5x1xf32> to vector<5x5xf32>
    %145 = arith.mulf %140, %144 : vector<5x5xf32>
    %146 = arith.truncf %145 : vector<5x5xf32> to vector<5x5xbf16>
    %cst_48 = arith.constant dense<0.000000e+00> : vector<5x32xf32>
    %147 = tpu.matmul %146, %132, %cst_48 {dimension_numbers = #tpu.dot_dimension_numbers<[1], [0], [0], [1], [0, 0, 1, 1], [], []>} : vector<5x5xbf16>, vector<5x32xbf16>, vector<5x32xf32> -> vector<5x32xf32>
    %148 = vector.extract_strided_slice %38 {offsets = [5, 64], sizes = [5, 32], strides = [1, 1]} : vector<10x384xbf16> to vector<5x32xbf16>
    %149 = vector.extract_strided_slice %38 {offsets = [5, 192], sizes = [5, 32], strides = [1, 1]} : vector<10x384xbf16> to vector<5x32xbf16>
    %150 = vector.extract_strided_slice %38 {offsets = [5, 320], sizes = [5, 32], strides = [1, 1]} : vector<10x384xbf16> to vector<5x32xbf16>
    %cst_49 = arith.constant dense<0.000000e+00> : vector<5x5xf32>
    %151 = tpu.matmul %148, %149, %cst_49 {dimension_numbers = #tpu.dot_dimension_numbers<[1], [1], [0], [0], [0, 0, 1, 0], [], []>} : vector<5x32xbf16>, vector<5x32xbf16>, vector<5x5xf32> -> vector<5x5xf32>
    %cst_50 = arith.constant 0.176776692 : f32
    %152 = vector.broadcast %cst_50 : f32 to vector<5x5xf32>
    %153 = arith.mulf %151, %152 : vector<5x5xf32>
    %cst_51 = arith.constant dense<0xFF800000> : vector<5xf32>
    %154 = vector.multi_reduction <maximumf>, %153, %cst_51 [1] : vector<5x5xf32> to vector<5xf32>
    %155 = vector.shape_cast %154 : vector<5xf32> to vector<5x1xf32>
    %156 = vector.broadcast %155 : vector<5x1xf32> to vector<5x5xf32>
    %157 = arith.subf %153, %156 : vector<5x5xf32>
    %158 = math.exp %157 : vector<5x5xf32>
    %cst_52 = arith.constant dense<0.000000e+00> : vector<5xf32>
    %159 = vector.multi_reduction <add>, %158, %cst_52 [1] : vector<5x5xf32> to vector<5xf32>
    %160 = vector.shape_cast %159 : vector<5xf32> to vector<5x1xf32>
    %161 = tpu.reciprocal %160 {approx = true} : vector<5x1xf32> -> vector<5x1xf32>
    %162 = vector.broadcast %161 : vector<5x1xf32> to vector<5x5xf32>
    %163 = arith.mulf %158, %162 : vector<5x5xf32>
    %164 = arith.truncf %163 : vector<5x5xf32> to vector<5x5xbf16>
    %cst_53 = arith.constant dense<0.000000e+00> : vector<5x32xf32>
    %165 = tpu.matmul %164, %150, %cst_53 {dimension_numbers = #tpu.dot_dimension_numbers<[1], [0], [0], [1], [0, 0, 1, 1], [], []>} : vector<5x5xbf16>, vector<5x32xbf16>, vector<5x32xf32> -> vector<5x32xf32>
    %166 = vector.extract_strided_slice %38 {offsets = [5, 96], sizes = [5, 32], strides = [1, 1]} : vector<10x384xbf16> to vector<5x32xbf16>
    %167 = vector.extract_strided_slice %38 {offsets = [5, 224], sizes = [5, 32], strides = [1, 1]} : vector<10x384xbf16> to vector<5x32xbf16>
    %168 = vector.extract_strided_slice %38 {offsets = [5, 352], sizes = [5, 32], strides = [1, 1]} : vector<10x384xbf16> to vector<5x32xbf16>
    %cst_54 = arith.constant dense<0.000000e+00> : vector<5x5xf32>
    %169 = tpu.matmul %166, %167, %cst_54 {dimension_numbers = #tpu.dot_dimension_numbers<[1], [1], [0], [0], [0, 0, 1, 0], [], []>} : vector<5x32xbf16>, vector<5x32xbf16>, vector<5x5xf32> -> vector<5x5xf32>
    %cst_55 = arith.constant 0.176776692 : f32
    %170 = vector.broadcast %cst_55 : f32 to vector<5x5xf32>
    %171 = arith.mulf %169, %170 : vector<5x5xf32>
    %cst_56 = arith.constant dense<0xFF800000> : vector<5xf32>
    %172 = vector.multi_reduction <maximumf>, %171, %cst_56 [1] : vector<5x5xf32> to vector<5xf32>
    %173 = vector.shape_cast %172 : vector<5xf32> to vector<5x1xf32>
    %174 = vector.broadcast %173 : vector<5x1xf32> to vector<5x5xf32>
    %175 = arith.subf %171, %174 : vector<5x5xf32>
    %176 = math.exp %175 : vector<5x5xf32>
    %cst_57 = arith.constant dense<0.000000e+00> : vector<5xf32>
    %177 = vector.multi_reduction <add>, %176, %cst_57 [1] : vector<5x5xf32> to vector<5xf32>
    %178 = vector.shape_cast %177 : vector<5xf32> to vector<5x1xf32>
    %179 = tpu.reciprocal %178 {approx = true} : vector<5x1xf32> -> vector<5x1xf32>
    %180 = vector.broadcast %179 : vector<5x1xf32> to vector<5x5xf32>
    %181 = arith.mulf %176, %180 : vector<5x5xf32>
    %182 = arith.truncf %181 : vector<5x5xf32> to vector<5x5xbf16>
    %cst_58 = arith.constant dense<0.000000e+00> : vector<5x32xf32>
    %183 = tpu.matmul %182, %168, %cst_58 {dimension_numbers = #tpu.dot_dimension_numbers<[1], [0], [0], [1], [0, 0, 1, 1], [], []>} : vector<5x5xbf16>, vector<5x32xbf16>, vector<5x32xf32> -> vector<5x32xf32>
    %184 = tpu.concatenate %129, %147, %165, %183 in 1 : vector<5x32xf32>, vector<5x32xf32>, vector<5x32xf32>, vector<5x32xf32> -> vector<5x128xf32>
    %185 = tpu.concatenate %111, %184 in 0 : vector<5x128xf32>, vector<5x128xf32> -> vector<10x128xf32>
    %186 = arith.truncf %185 : vector<10x128xf32> to vector<10x128xbf16>
    %c0_59 = arith.constant 0 : index
    %c0_60 = arith.constant 0 : index
    %c0_61 = arith.constant 0 : index
    %187 = vector.load %arg6[%c0_59, %c0_60, %c0_61] : memref<1x128x128xbf16, #tpu.memory_space<vmem>>, vector<1x128x128xbf16>
    %188 = vector.shape_cast %187 : vector<1x128x128xbf16> to vector<128x128xbf16>
    %cst_62 = arith.constant dense<0.000000e+00> : vector<10x128xf32>
    %189 = tpu.matmul %186, %188, %cst_62 {dimension_numbers = #tpu.dot_dimension_numbers<[1], [0], [0], [1], [0, 0, 1, 1], [], []>} : vector<10x128xbf16>, vector<128x128xbf16>, vector<10x128xf32> -> vector<10x128xf32>
    %c0_63 = arith.constant 0 : index
    %c0_64 = arith.constant 0 : index
    %c0_65 = arith.constant 0 : index
    %190 = vector.load %arg7[%c0_63, %c0_64, %c0_65] : memref<1x1x128xf32, #tpu.memory_space<vmem>>, vector<1x1x128xf32>
    %191 = vector.shape_cast %190 : vector<1x1x128xf32> to vector<1x128xf32>
    %192 = vector.broadcast %191 : vector<1x128xf32> to vector<10x128xf32>
    %193 = arith.addf %189, %192 : vector<10x128xf32>
    %194 = arith.addf %3, %193 : vector<10x128xf32>
    %c0_66 = arith.constant 0 : index
    %c0_67 = arith.constant 0 : index
    %c0_68 = arith.constant 0 : index
    %195 = vector.load %arg8[%c0_66, %c0_67, %c0_68] : memref<1x1x128xf32, #tpu.memory_space<vmem>>, vector<1x1x128xf32>
    %196 = vector.shape_cast %195 : vector<1x1x128xf32> to vector<1x128xf32>
    %c0_69 = arith.constant 0 : index
    %c0_70 = arith.constant 0 : index
    %c0_71 = arith.constant 0 : index
    %197 = vector.load %arg9[%c0_69, %c0_70, %c0_71] : memref<1x1x128xf32, #tpu.memory_space<vmem>>, vector<1x1x128xf32>
    %198 = vector.shape_cast %197 : vector<1x1x128xf32> to vector<1x128xf32>
    %cst_72 = arith.constant dense<0.000000e+00> : vector<10xf32>
    %199 = vector.multi_reduction <add>, %194, %cst_72 [1] : vector<10x128xf32> to vector<10xf32>
    %200 = vector.shape_cast %199 : vector<10xf32> to vector<10x1xf32>
    %cst_73 = arith.constant 1.280000e+02 : f32
    %201 = vector.broadcast %cst_73 : f32 to vector<10x1xf32>
    %202 = arith.divf %200, %201 : vector<10x1xf32>
    %203 = vector.broadcast %202 : vector<10x1xf32> to vector<10x128xf32>
    %204 = arith.subf %194, %203 : vector<10x128xf32>
    %205 = arith.mulf %204, %204 : vector<10x128xf32>
    %cst_74 = arith.constant dense<0.000000e+00> : vector<10xf32>
    %206 = vector.multi_reduction <add>, %205, %cst_74 [1] : vector<10x128xf32> to vector<10xf32>
    %207 = vector.shape_cast %206 : vector<10xf32> to vector<10x1xf32>
    %cst_75 = arith.constant 1.280000e+02 : f32
    %208 = vector.broadcast %cst_75 : f32 to vector<10x1xf32>
    %209 = arith.divf %207, %208 : vector<10x1xf32>
    %210 = vector.broadcast %202 : vector<10x1xf32> to vector<10x128xf32>
    %211 = arith.subf %194, %210 : vector<10x128xf32>
    %cst_76 = arith.constant 9.99999974E-6 : f32
    %212 = vector.broadcast %cst_76 : f32 to vector<10x1xf32>
    %213 = arith.addf %209, %212 : vector<10x1xf32>
    %214 = math.rsqrt %213 : vector<10x1xf32>
    %215 = vector.broadcast %214 : vector<10x1xf32> to vector<10x128xf32>
    %216 = arith.mulf %211, %215 : vector<10x128xf32>
    %217 = vector.broadcast %196 : vector<1x128xf32> to vector<10x128xf32>
    %218 = arith.mulf %216, %217 : vector<10x128xf32>
    %219 = vector.broadcast %198 : vector<1x128xf32> to vector<10x128xf32>
    %220 = arith.addf %218, %219 : vector<10x128xf32>
    %221 = arith.truncf %220 : vector<10x128xf32> to vector<10x128xbf16>
    %c0_77 = arith.constant 0 : index
    %c0_78 = arith.constant 0 : index
    %c0_79 = arith.constant 0 : index
    %222 = vector.load %arg10[%c0_77, %c0_78, %c0_79] : memref<1x128x512xbf16, #tpu.memory_space<vmem>>, vector<1x128x512xbf16>
    %223 = vector.shape_cast %222 : vector<1x128x512xbf16> to vector<128x512xbf16>
    %cst_80 = arith.constant dense<0.000000e+00> : vector<10x512xf32>
    %224 = tpu.matmul %221, %223, %cst_80 {dimension_numbers = #tpu.dot_dimension_numbers<[1], [0], [0], [1], [0, 0, 1, 1], [], []>} : vector<10x128xbf16>, vector<128x512xbf16>, vector<10x512xf32> -> vector<10x512xf32>
    %c0_81 = arith.constant 0 : index
    %c0_82 = arith.constant 0 : index
    %c0_83 = arith.constant 0 : index
    %225 = vector.load %arg11[%c0_81, %c0_82, %c0_83] : memref<1x1x512xf32, #tpu.memory_space<vmem>>, vector<1x1x512xf32>
    %226 = vector.shape_cast %225 : vector<1x1x512xf32> to vector<1x512xf32>
    %227 = vector.broadcast %226 : vector<1x512xf32> to vector<10x512xf32>
    %228 = arith.addf %224, %227 : vector<10x512xf32>
    %cst_84 = arith.constant 1.702000e+00 : f32
    %229 = vector.broadcast %cst_84 : f32 to vector<10x512xf32>
    %230 = arith.mulf %229, %228 : vector<10x512xf32>
    %231 = arith.negf %230 : vector<10x512xf32>
    %232 = math.exp %231 : vector<10x512xf32>
    %cst_85 = arith.constant 1.000000e+00 : f32
    %233 = vector.broadcast %cst_85 : f32 to vector<10x512xf32>
    %234 = arith.addf %233, %232 : vector<10x512xf32>
    %235 = arith.divf %233, %234 : vector<10x512xf32>
    %236 = arith.mulf %228, %235 : vector<10x512xf32>
    %237 = arith.truncf %236 : vector<10x512xf32> to vector<10x512xbf16>
    %c0_86 = arith.constant 0 : index
    %c0_87 = arith.constant 0 : index
    %c0_88 = arith.constant 0 : index
    %238 = vector.load %arg12[%c0_86, %c0_87, %c0_88] : memref<1x512x128xbf16, #tpu.memory_space<vmem>>, vector<1x512x128xbf16>
    %239 = vector.shape_cast %238 : vector<1x512x128xbf16> to vector<512x128xbf16>
    %cst_89 = arith.constant dense<0.000000e+00> : vector<10x128xf32>
    %240 = tpu.matmul %237, %239, %cst_89 {dimension_numbers = #tpu.dot_dimension_numbers<[1], [0], [0], [1], [0, 0, 1, 1], [], []>} : vector<10x512xbf16>, vector<512x128xbf16>, vector<10x128xf32> -> vector<10x128xf32>
    %241 = arith.addf %194, %240 : vector<10x128xf32>
    %c0_90 = arith.constant 0 : index
    %c0_91 = arith.constant 0 : index
    %c0_92 = arith.constant 0 : index
    %242 = vector.load %arg13[%c0_90, %c0_91, %c0_92] : memref<1x1x128xf32, #tpu.memory_space<vmem>>, vector<1x1x128xf32>
    %243 = vector.shape_cast %242 : vector<1x1x128xf32> to vector<1x128xf32>
    %244 = vector.broadcast %243 : vector<1x128xf32> to vector<10x128xf32>
    %245 = arith.addf %241, %244 : vector<10x128xf32>
    %c0_93 = arith.constant 0 : index
    %c0_94 = arith.constant 0 : index
    %246 = vector.load %arg15[%c0_93, %c0_94] : memref<10x128xf32, #tpu.memory_space<vmem>>, vector<10x128xf32>
    tpu.vector_store %arg15[%c0_93, %c0_94], %245 {strides = array<i32>} : memref<10x128xf32, #tpu.memory_space<vmem>>, vector<10x128xf32>,
    %c0_95 = arith.constant 0 : index
    %c0_96 = arith.constant 0 : index
    %c0_97 = arith.constant 0 : index
    %247 = vector.load %arg14[%c0_95, %c0_96, %c0_97] : memref<1x10x128xf32, #tpu.memory_space<vmem>>, vector<1x10x128xf32>
    %248 = vector.shape_cast %247 : vector<1x10x128xf32> to vector<10x128xf32>
    %249 = vector.shape_cast %245 : vector<10x128xf32> to vector<1x10x128xf32>
    tpu.vector_store %arg14[%c0_95, %c0_96, %c0_97], %249 {strides = array<i32>} : memref<1x10x128xf32, #tpu.memory_space<vmem>>, vector<1x10x128xf32>,
    return
  }
  func.func @transform_0(%arg0: i32) -> (i32, i32) {
    %c0_i32 = arith.constant 0 : i32
    %c0_i32_0 = arith.constant 0 : i32
    %c0_i32_1 = arith.constant 0 : i32
    return %c0_i32, %c0_i32_0 : i32, i32
  }
  func.func @transform_1(%arg0: i32) -> (i32, i32, i32) {
    %c0_i32 = arith.constant 0 : i32
    %c0_i32_0 = arith.constant 0 : i32
    %c0_i32_1 = arith.constant 0 : i32
    return %arg0, %c0_i32, %c0_i32_0 : i32, i32, i32
  }
  func.func @transform_2(%arg0: i32) -> (i32, i32, i32) {
    %c0_i32 = arith.constant 0 : i32
    %c0_i32_0 = arith.constant 0 : i32
    %c0_i32_1 = arith.constant 0 : i32
    return %arg0, %c0_i32, %c0_i32_0 : i32, i32, i32
  }
  func.func @transform_3(%arg0: i32) -> (i32, i32, i32) {
    %c0_i32 = arith.constant 0 : i32
    %c0_i32_0 = arith.constant 0 : i32
    %c0_i32_1 = arith.constant 0 : i32
    return %arg0, %c0_i32, %c0_i32_0 : i32, i32, i32
  }
  func.func @transform_4(%arg0: i32) -> (i32, i32, i32) {
    %c0_i32 = arith.constant 0 : i32
    %c0_i32_0 = arith.constant 0 : i32
    %c0_i32_1 = arith.constant 0 : i32
    return %arg0, %c0_i32, %c0_i32_0 : i32, i32, i32
  }
  func.func @transform_5(%arg0: i32) -> (i32, i32, i32) {
    %c0_i32 = arith.constant 0 : i32
    %c0_i32_0 = arith.constant 0 : i32
    %c0_i32_1 = arith.constant 0 : i32
    return %arg0, %c0_i32, %c0_i32_0 : i32, i32, i32
  }
  func.func @transform_6(%arg0: i32) -> (i32, i32, i32) {
    %c0_i32 = arith.constant 0 : i32
    %c0_i32_0 = arith.constant 0 : i32
    %c0_i32_1 = arith.constant 0 : i32
    return %arg0, %c0_i32, %c0_i32_0 : i32, i32, i32
  }
  func.func @transform_7(%arg0: i32) -> (i32, i32, i32) {
    %c0_i32 = arith.constant 0 : i32
    %c0_i32_0 = arith.constant 0 : i32
    %c0_i32_1 = arith.constant 0 : i32
    return %arg0, %c0_i32, %c0_i32_0 : i32, i32, i32
  }
  func.func @transform_8(%arg0: i32) -> (i32, i32, i32) {
    %c0_i32 = arith.constant 0 : i32
    %c0_i32_0 = arith.constant 0 : i32
    %c0_i32_1 = arith.constant 0 : i32
    return %arg0, %c0_i32, %c0_i32_0 : i32, i32, i32
  }
  func.func @transform_9(%arg0: i32) -> (i32, i32, i32) {
    %c0_i32 = arith.constant 0 : i32
    %c0_i32_0 = arith.constant 0 : i32
    %c0_i32_1 = arith.constant 0 : i32
    return %arg0, %c0_i32, %c0_i32_0 : i32, i32, i32
  }
  func.func @transform_10(%arg0: i32) -> (i32, i32, i32) {
    %c0_i32 = arith.constant 0 : i32
    %c0_i32_0 = arith.constant 0 : i32
    %c0_i32_1 = arith.constant 0 : i32
    return %arg0, %c0_i32, %c0_i32_0 : i32, i32, i32
  }
  func.func @transform_11(%arg0: i32) -> (i32, i32, i32) {
    %c0_i32 = arith.constant 0 : i32
    %c0_i32_0 = arith.constant 0 : i32
    %c0_i32_1 = arith.constant 0 : i32
    return %arg0, %c0_i32, %c0_i32_0 : i32, i32, i32
  }
  func.func @transform_12(%arg0: i32) -> (i32, i32, i32) {
    %c0_i32 = arith.constant 0 : i32
    %c0_i32_0 = arith.constant 0 : i32
    %c0_i32_1 = arith.constant 0 : i32
    return %arg0, %c0_i32, %c0_i32_0 : i32, i32, i32
  }
  func.func @transform_13(%arg0: i32) -> (i32, i32, i32) {
    %c0_i32 = arith.constant 0 : i32
    %c0_i32_0 = arith.constant 0 : i32
    %c0_i32_1 = arith.constant 0 : i32
    return %arg0, %c0_i32, %c0_i32_0 : i32, i32, i32
  }
}

</mosaic_0001>

<bundles_post_ra>
// kernel: squeeze.1
= control target key start
LH: loop header
LB: loop body
LE: loop exit
PB: predicated region body
PF: predicated region fallthrough
CT: control target
= control target key end

     0   :  { %s38_s0 = inlined_call_operand.vmem [shape: f32[1,10,128], index: 0, kind: input, shape index: {}]   ;;  %s39_s1 = inlined_call_operand.vmem [shape: f32[2,5,128], index: 1, kind: output, shape index: {}]  }
   0x1   :  { %v2_v0 = vld [vmem:[%s38_s0] sm:$0xff]   ;;  %v11_v1 = vld [vmem:[%s38_s0 + $0x8] sm:$0x3]  }
   0x2   :  { %3 = vst [vmem:[%s39_s1] sm:$0x1f] %v2_v0   ;;  %10 = vst [vmem:[%s39_s1 + $0x3] sm:$0xe0] %v2_v0  }
   0x3   :  { %12 = vst [vmem:[%s39_s1 + $0xb] sm:$0x3] %v11_v1  }

// kernel: _lambda_.2
= control target key start
LH: loop header
LB: loop body
LE: loop exit
PB: predicated region body
PF: predicated region fallthrough
CT: control target
= control target key end

     0   :  { %v261_v0 = vmov 0   ;;  %vm132_vm0 = vcmask 523264   ;;  %vm206_vm1 = vcmask 1040384   ;;  %v189_v38 = vlaneseq  ;;  %s372_s1 = inlined_call_operand.vmem [shape: bf16[192,128], index: 1, kind: input, shape index: {}]   ;;  %s373_s0 = inlined_call_operand.vmem [shape: f32[8,192], index: 0, kind: input, shape index: {}]   ;;  %s374_s3 = inlined_call_operand.vmem [shape: f32[1,128], index: 3, kind: input, shape index: {}]   ;;  %s375_s4 = inlined_call_operand.vmem [shape: f32[1,128], index: 4, kind: input, shape index: {}]   ;;  %s376_s2 = inlined_call_operand.vmem [shape: f32[8,128], index: 2, kind: input, shape index: {}]   ;;  %s377_s5 = inlined_call_operand.vmem [shape: f32[1,128], index: 5, kind: input, shape index: {}]   ;;  %s378_s6 = inlined_call_operand.vmem [shape: f32[1,128], index: 6, kind: input, shape index: {}]   ;;  %s379_s7 = inlined_call_operand.vmem [shape: f32[8,128], index: 7, kind: output, shape index: {0}]   ;;  %s380_s8 = inlined_call_operand.vmem [shape: f32[1,128], index: 8, kind: output, shape index: {1}]  }
   0x1   :  { %136 = vmatprep.subr.bf16.mxu0 %v261_v0  ;;  %v245_v1 = vld [vmem:[%s372_s1] sm:$0xff]   ;;  %v246_v2 = vld [vmem:[%s372_s1 + $0x8] sm:$0xff]   ;;  %v247_v3 = vld [vmem:[%s372_s1 + $0x10] sm:$0xff]  }
   0x2   :  { %137 = vmatpush1.bf16.msra.mxu0 %v245_v1  ;;  %v248_v4 = vld [vmem:[%s372_s1 + $0x18] sm:$0xff]   ;;  %v30_v5 = vld [vmem:[%s373_s0 + $0x8] sm:$0xff]  ;;  %v203_v6 = vld [vmem:[%s374_s3] sm:$0x1]  ;;  %v190_v42 = vshrl.u32 %v189_v38, 7 }
   0x3   :  { %138 = vmatprep.subr.bf16.mxu0 %v261_v0  ;;  %v32_v7 = vpack.c.bf16 %v30_v5, %v30_v5  ;;  %v204_v8 = vld [vmem:[%s375_s4] sm:$0x1]  ;;  %v250_v12 = vld [vmem:[%s372_s1 + $0x28] sm:$0xff]   ;;  %v251_v13 = vld [vmem:[%s372_s1 + $0x30] sm:$0xff]  }
   0x4   :  { %v249_v9 = vld [vmem:[%s372_s1 + $0x20] sm:$0xff]   ;;  %v205_v10 = vadd.f32 %v204_v8, %v203_v6  ;;  %v252_v14 = vld [vmem:[%s372_s1 + $0x38] sm:$0xff]   ;;  %v254_v16 = vld [vmem:[%s372_s1 + $0x48] sm:$0xff]   ;;  %v191_v44 = vsub.s32 0, %v190_v42 }
   0x5   :  { %243 = vmatprep.mubr.msk.bf16.mxu0 %vm132_vm0, %v32_v7  ;;  %v253_v15 = vld [vmem:[%s372_s1 + $0x40] sm:$0xff]   ;;  %v255_v17 = vld [vmem:[%s372_s1 + $0x50] sm:$0xff]   ;;  %v256_v18 = vld [vmem:[%s372_s1 + $0x58] sm:$0xff]  }
   0x6   :  { %139 = vmatpush1.bf16.msra.mxu0 %v246_v2  ;;  %v207_v11 = vsel %vm206_vm1, %v205_v10, 0.0  ;;  %v29_v19 = vld [vmem:[%s373_s0] sm:$0xff] }
   0x7   :  { %140 = vmatprep.subr.bf16.mxu0 %v261_v0  ;;  %208 = vadd.xlane.f32.xlu0 %v207_v11  ;;  %v31_v20 = vpack.c.bf16 %v29_v19, %v29_v19  ;;  %v59_v21 = vld [vmem:[%s376_s2] sm:$0xff] }
   0x8   :  { %v57_v45 = vld [vmem:[%s377_s5] sm:$0x1] }
   0x9   :  { %v58_v46 = vld [vmem:[%s378_s6] sm:$0x1]  ;;  %v192_v47 = vrot.slane %v57_v45, %v191_v44 }
   0xa   :  { %141 = vmatpush1.bf16.msra.mxu0 %v247_v3  ;;  %v199_v49 = vrot.slane %v58_v46, %v191_v44 }
   0xb   :  { %142 = vmatprep.subr.bf16.mxu0 %v261_v0 }
   0xe   :  { %143 = vmatpush1.bf16.msra.mxu0 %v248_v4 }
   0xf   :  { %144 = vmatprep.subr.bf16.mxu0 %v261_v0 }
  0x12   :  { %145 = vmatpush1.bf16.msra.mxu0 %v249_v9 }
  0x13   :  { %146 = vmatprep.subr.bf16.mxu0 %v261_v0 }
  0x16   :  { %147 = vmatpush1.bf16.msra.mxu0 %v250_v12 }
  0x17   :  { %148 = vmatprep.subr.bf16.mxu0 %v261_v0 }
  0x1a   :  { %149 = vmatpush1.bf16.msra.mxu0 %v251_v13 }
  0x1b   :  { %150 = vmatprep.subr.bf16.mxu0 %v261_v0 }
  0x1e   :  { %151 = vmatpush1.bf16.msra.mxu0 %v252_v14 }
  0x1f   :  { %152 = vmatprep.subr.bf16.mxu0 %v261_v0 }
  0x22   :  { %153 = vmatpush1.bf16.msra.mxu0 %v253_v15 }
  0x23   :  { %154 = vmatprep.subr.bf16.mxu0 %v261_v0 }
  0x26   :  { %155 = vmatpush1.bf16.msra.mxu0 %v254_v16 }
  0x27   :  { %156 = vmatprep.subr.bf16.mxu0 %v261_v0 }
  0x2a   :  { %157 = vmatpush1.bf16.msra.mxu0 %v255_v17 }
  0x2b   :  { %158 = vmatprep.subr.bf16.mxu0 %v261_v0 }
  0x2e   :  { %159 = vmatpush1.bf16.msra.mxu0 %v256_v18 }
  0x31   :  { %169 = vmatmul.mubr.bf16.vlgmr.msra.gmra.mrb[0].mxu0 %v31_v20 }
  0x94   :  { %v209_v27 = vpop.xlane.xlu0 %208 }
  0x95   :  { %v210_v28 = vmul.f32 0.0078125, %v209_v27 }
  0x97   :  { %v211_v31 = vsub.f32 %v205_v10, %v210_v28 }
  0x99   :  { %v212_v34 = vmul.f32 %v211_v31, %v211_v31 }
  0x9b   :  { %v213_v35 = vsel %vm206_vm1, %v212_v34, 0.0 }
 0x104   :  { %v170_v22 = vpop.f32.mrb[0].mxu0 }
 0x105   :  { %v171_v23 = vadd.f32 %v170_v22, %v59_v21  ;;  %v172_v24 = vpop.f32.mrb[1].mxu0 }
 0x106   :  { %v173_v25 = vpop.f32.mrb[2].mxu0 }
 0x107   :  { %v174_v26 = vpop.f32.mrb[3].mxu0  ;;  %176 = vadd.xlane.f32.xlu0 %v171_v23 }
 0x194   :  { %v177_v29 = vpop.xlane.xlu0 %176 }
 0x195   :  { %v179_v30 = vmul.f32 0.0078125, %v177_v29 }
 0x197   :  { %v180_v32 = vsub.f32 %v171_v23, %v179_v30 }
 0x199   :  { %v181_v33 = vmul.f32 %v180_v32, %v180_v32 }
 0x19b   :  { %182 = vadd.xlane.f32.xlu1 %v181_v33 }
 0x19f   :  { %214 = vadd.xlane.f32.xlu1 %v213_v35 }
 0x228   :  { %v183_v36 = vpop.xlane.xlu1 %182 }
 0x229   :  { %v184_v37 = vmul.f32 0.0078125, %v183_v36 }
 0x22b   :  { %v185_v39 = vadd.f32 1e-05, %v184_v37 }
 0x22c   :  { %v215_v40 = vpop.xlane.xlu1 %214 }
 0x22d   :  { %257 = vrsqrt.f32 %v185_v39  ;;  %v216_v41 = vmul.f32 0.0078125, %v215_v40 }
 0x22f   :  { %v217_v43 = vadd.f32 1e-05, %v216_v41 }
 0x231   :  { %259 = vrsqrt.f32 %v217_v43 }
 0x237   :  { %v258_v48 = vpop.eup %257 }
 0x238   :  { %v187_v50 = vmul.f32 %v258_v48, %v180_v32 }
 0x23a   :  { %v194_v51 = vmul.f32 %v192_v47, %v187_v50 }
 0x23b   :  { %v260_v52 = vpop.eup %259 }
 0x23c   :  { %v201_v53 = vadd.f32 %v199_v49, %v194_v51  ;;  %v219_v54 = vmul.f32 %v260_v52, %v211_v31 }
 0x23e   :  { %202 = vst [vmem:[%s379_s7] sm:$0xff] %v201_v53  ;;  %v220_v55 = vmul.f32 %v219_v54, %v57_v45 }
 0x240   :  { %v221_v56 = vadd.f32 %v220_v55, %v58_v46 }
 0x242   :  { %222 = vst [vmem:[%s380_s8] sm:$0x1] %v221_v56 }

// kernel: _lambda_.3
= control target key start
LH: loop header
LB: loop body
LE: loop exit
PB: predicated region body
PF: predicated region fallthrough
CT: control target
= control target key end

     0   :  { %s4417_s0 = inlined_call_operand.vmem [shape: f32[10,128], index: 0, kind: input, shape index: {}]   ;;  %s4418_s1 = inlined_call_operand.vmem [shape: f32[3,1,128], index: 1, kind: input, shape index: {}]   ;;  %s4419_s2 = inlined_call_operand.vmem [shape: f32[3,1,128], index: 2, kind: input, shape index: {}]   ;;  %s4420_s3 = inlined_call_operand.hbm [shape: bf16[3,128,384], index: 3, kind: input, shape index: {}]   ;;  %s4421_s4 = inlined_call_operand.vmem [shape: f32[3,1,384], index: 4, kind: input, shape index: {}]   ;;  %s4422_s5 = inlined_call_operand.vmem [shape: bf16[3,128,128], index: 5, kind: input, shape index: {}]   ;;  %s4423_s6 = inlined_call_operand.vmem [shape: f32[3,1,128], index: 6, kind: input, shape index: {}]   ;;  %s4424_s7 = inlined_call_operand.vmem [shape: f32[3,1,128], index: 7, kind: input, shape index: {}]   ;;  %s4425_s8 = inlined_call_operand.vmem [shape: f32[3,1,128], index: 8, kind: input, shape index: {}]   ;;  %s4426_s9 = inlined_call_operand.vmem [shape: bf16[3,128,512], index: 9, kind: input, shape index: {}]   ;;  %s4427_s10 = inlined_call_operand.vmem [shape: f32[3,1,512], index: 10, kind: input, shape index: {}]   ;;  %s4428_s11 = inlined_call_operand.hbm [shape: bf16[3,512,128], index: 11, kind: input, shape index: {}]   ;;  %s4429_s12 = inlined_call_operand.vmem [shape: f32[3,1,128], index: 12, kind: input, shape index: {}]   ;;  %s4430_s13 = inlined_call_operand.vmem [shape: f32[3,10,128], index: 13, kind: output, shape index: {}]  }
   0x1   :  { %4438 = sst [smem:[#allocation14_spill]] %s4417_s0 }
   0x2   :  { %4439 = sst [smem:[#allocation15_spill]] %s4420_s3 }
   0x3   :  { %4440 = sst [smem:[#allocation16_spill]] %s4422_s5 }
   0x4   :  { %4441 = sst [smem:[#allocation17_spill]] %s4428_s11 }
   0x5   :  { %18 = vsyncpa [#allocation4], 0 }
   0x6   :  { %20 = vsyncpa [#allocation4 + $0x1], 0 }
   0x7   :  { %21 = vsyncpa [#allocation6], 0 }
   0x8   :  { %23 = vsyncpa [#allocation6 + $0x1], 0  ;;  %s3818_s25 = smov 0   ;;  %s3820_s26 = smov 0  }
   0x9   :  { %s3822_s27 = smov 0   ;;  %s3824_s28 = smov 0  }
   0xa LB: > { %4442 = sst [smem:[#allocation9_spill]] %s3725_s26  ;;  %s3837_s29 = sadd.s32 4294967295, %s3733_s28   ;;  %s3733_s28 = sphi %s3824_s28, %s4461_s28   ;;  %s3729_s27 = sphi %s3822_s27, %s4464_s27   ;;  %s3725_s26 = sphi %s3820_s26, %s4463_s26   ;;  %s3721_s25 = sphi %s3818_s25, %s4462_s25  }
   0xb   : > { %4443 = sst [smem:[#allocation10_spill]] %s3729_s27  ;;  %s3840_s30 = sadd.s32 1, %s3733_s28  }
   0xc   : > { %4444 = sst [smem:[#allocation11_spill]] %s3840_s30  ;;  %s106_s14 = ssub.s32 %s3733_s28, %s3840_s30 }
   0xd   : > { %s109_s15 = sadd.s32 1, %s3729_s27  ;;  %p107_p0 = scmp.eq.s32.totalorder %s106_s14, 0 }
   0xe   : > { %p116_p1 = scmp.ne.s32.totalorder %s3729_s27, %s3725_s26  ;;  %p117_p2 = scmp.eq.s32.totalorder %s3733_s28, 0 }
   0xf   : > { %p122_p3 = scmp.ne.s32.totalorder %s3725_s26, %s3721_s25  ;;  %p123_p5 = scmp.eq.s32.totalorder %s3837_s29, 0 }
  0x10   : > { %s3850_s16 = scalar_select %p107_p0, %s3729_s27, %s109_s15  }
  0x11   : > { %p118_p4 = por %p117_p2, %p116_p1  ;;  %p3387_p6 = scmp.lt.s32.totalorder %s3733_s28, 3 }
  0x12   : > { %4445 = sst [smem:[#allocation12_spill]] %s3850_s16  ;;  %p3854_p7 = por %p123_p5, %p122_p3 }
  0x13   : > { %s3859_s18 = sand.u32 1, %s3729_s27   ;;  %s3373_s20 = smul.u32 3072, %s3733_s28 }
  0x14   : > { %s4446_s17 = scalar_select %p3854_p7, 1, 0 }
  0x15   : > { %s3372_s19 = smul.u32 192, %s3859_s18  ;;  %p3863_p8 = pnand %p3387_p6, %p118_p4 }
  0x16   : > { %s4448_s3 = sld [smem:[#allocation15_spill]]  ;;  %s422_s15 = scalar_lea.sflag [#allocation4], %s3859_s18 }
  0x17   : > { %s425_s25 = scalar_lea.vmem [#allocation3], %s3372_s19  ;;  %p3637_p11 = pneg %p3863_p8 }
  0x18   : > { %s432_s14 = sshll.u32 %s425_s25, 4  ;;  %s3872_s14 = int_to_ptr.vmem [resolvable:$true] %s432_s14 }
  0x1c   : > { %s3870_s24 = scalar_lea.hbm %s4448_s3, %s3373_s20  ;;  %s3640_s23 = scalar_lea.hbm %s4448_s3, 9216 }
  0x1d   : > { %s3635_s16 = scalar_lea.hbm %s3870_s24, 3072  ;;  %p3641_p0 = scmp.lt.u32.totalorder %s3870_s24, %s4448_s3 }
  0x1e   : > { %p3636_p10 = scmp.ne.s32.totalorder %s3870_s24, %s3635_s16  ;;  %p3642_p1 = scmp.lt.u32.totalorder %s3640_s23, %s3635_s16 }
  0x1f   : > { %p3644_p3 = scmp.lt.u32.totalorder %s3635_s16, %s3870_s24 }
  0x20   : > { %p3638_p12 = pnand %p3637_p11, %p3636_p10  ;;  %p3643_p2 = por %p3642_p1, %p3641_p0 }
  0x22   : > { %p3639_p13 = pneg %p3638_p12  ;;  %p3645_p4 = por %p3644_p3, %p3643_p2 }
  0x24   : > { %p3646_p5 = pnand %p3645_p4, %p3639_p13 }
  0x26   : > { %3649 = shalt.err (!%p3646_p5)
}
  0x27   : > { %s3650_s19 = scalar_lea.vmem %s3872_s14, 3072  ;;  %s3735_s25 = smov [#allocation3]  }
  0x28   : > { %p3651_p6 = scmp.ne.s32.totalorder %s3872_s14, %s3650_s19  ;;  %s3655_s20 = sshll.u32 %s3735_s25, 4  ;;  %s3656_s20 = int_to_ptr.vmem [resolvable:$false] %s3655_s20 }
  0x29   : > { %s3657_s27 = scalar_lea.vmem %s3656_s20, 6144  ;;  %p3658_p9 = scmp.lt.s32.totalorder %s3872_s14, %s3656_s20 }
  0x2a   : > { %p3653_p10 = pnand %p3651_p6, %p3637_p11  ;;  %p3659_p0 = scmp.lt.s32.totalorder %s3657_s27, %s3650_s19 }
  0x2c   : > { %p3654_p12 = pneg %p3653_p10  ;;  %p3660_p1 = por %p3659_p0, %p3658_p9 }
  0x2e   : > { %p3661_p2 = pnand %p3660_p1, %p3654_p12 }
  0x30   : > { %3664 = shalt.err (!%p3661_p2)
}
  0x31   : > { %s3736_s30 = smov 192   ;;  %s3737_s16 = smov 12  }
  0x32   : > { %3383 = dma.hbm_to_vmem [thread:$0]  (!%p3863_p8), %s3870_s24, 3072, %s3872_s14, %s422_s15, %s3736_s30, %s3736_s30, %s3737_s16  }
  0x33   : > { %p515_p13 = scmp.lt.s32.totalorder %s3733_s28, 4  ;;  %s2997_s22 = sshll.u32 %s3859_s18, 8 }
  0x34   : > { %s3138_s23 = sshll.u32 %s3733_s28, 12  ;;  %p4449_p9 = scmp.ge.s32.totalorder %s3733_s28, 1 }
  0x35   : > { %s4451_s11 = sld [smem:[#allocation17_spill]]  ;;  %s494_s3 = scalar_lea.vmem [#allocation5], %s2997_s22 }
  0x36   : > { %p3908_p3 = pnand %p4449_p9, %p515_p13  ;;  %s501_s0 = sshll.u32 %s494_s3, 4  ;;  %s3917_s0 = int_to_ptr.vmem [resolvable:$true] %s501_s0 }
  0x37   : > { %s491_s24 = scalar_lea.sflag [#allocation6], %s3859_s18 }
  0x3b   : > { %s3915_s27 = scalar_lea.hbm %s4451_s11, %s3138_s23  ;;  %s3670_s30 = scalar_lea.hbm %s4451_s11, 12288 }
  0x3c   : > { %s3665_s14 = scalar_lea.hbm %s3915_s27, 4096  ;;  %p3671_p10 = scmp.lt.u32.totalorder %s3915_s27, %s4451_s11 }
  0x3d   : > { %p3666_p4 = scmp.ne.s32.totalorder %s3915_s27, %s3665_s14  ;;  %p3672_p12 = scmp.lt.u32.totalorder %s3670_s30, %s3665_s14 }
  0x3e   : > { %p3674_p1 = scmp.lt.u32.totalorder %s3665_s14, %s3915_s27 }
  0x3f   : > { %p3668_p5 = pnand %p3666_p4, %p3637_p11  ;;  %p3673_p0 = por %p3672_p12, %p3671_p10 }
  0x41   : > { %p3669_p6 = pneg %p3668_p5  ;;  %p3675_p2 = por %p3674_p1, %p3673_p0 }
  0x43   : > { %p3676_p13 = pnand %p3675_p2, %p3669_p6 }
  0x45   : > { %3679 = shalt.err (!%p3676_p13)
}
  0x46   : > { %s3680_s3 = scalar_lea.vmem %s3917_s0, 4096  ;;  %s3738_s22 = smov [#allocation5]  }
  0x47   : > { %p3681_p9 = scmp.ne.s32.totalorder %s3917_s0, %s3680_s3  ;;  %s3685_s25 = sshll.u32 %s3738_s22, 4  ;;  %s3686_s25 = int_to_ptr.vmem [resolvable:$false] %s3685_s25 }
  0x48   : > { %s3687_s20 = scalar_lea.vmem %s3686_s25, 8192  ;;  %p3688_p7 = scmp.lt.s32.totalorder %s3917_s0, %s3686_s25 }
  0x49   : > { %p3683_p4 = pnand %p3681_p9, %p3637_p11  ;;  %p3689_p10 = scmp.lt.s32.totalorder %s3687_s20, %s3680_s3 }
  0x4b   : > { %p3684_p5 = pneg %p3683_p4  ;;  %p3690_p12 = por %p3689_p10, %p3688_p7 }
  0x4d   : > { %p3691_p0 = pnand %p3690_p12, %p3684_p5 }
  0x4f   : > { %3694 = shalt.err (!%p3691_p0)
}
  0x50   : > { %s3739_s14 = smov 64   ;;  %s3740_s28 = smov 4  }
  0x51   : > { %3386 = dma.hbm_to_vmem [thread:$0]  (!%p3863_p8), %s3915_s27, 4096, %s3917_s0, %s491_s24, %s3739_s14, %s3739_s14, %s3740_s28  }
  0x52   : > { %519 = sbr.rel (%p3908_p3) target bundleno = 3159 (0xc57), region = 72 }
  0x59   : > { %s521_s15 = sand.u32 1, %s3725_s26   ;;  %p4452_p7 = scmp.ne.s32.totalorder %s4446_s17, 0 }
  0x5a   : > { %s3374_s30 = smul.u32 192, %s521_s15  ;;  %s522_s16 = scalar_lea.sflag [#allocation4], %s521_s15 }
  0x5c   : > { %s3948_s23 = scalar_lea.vmem [#allocation3], %s3374_s30 }
  0x5d   : > { %3712 = dma.done.wait (%p4452_p7), %s522_s16, 3072  }
  0x5e   : > { %3714 = vsyncadd (%p4452_p7), %s522_s16, 4294964224  ;;  %s3001_s3 = sshll.u32 %s521_s15, 8  ;;  %s531_s21 = scalar_lea.sflag [#allocation6], %s521_s15 }
  0x5f   : > { %s3954_s18 = scalar_lea.vmem [#allocation5], %s3001_s3 }
  0x60   : > { %4453 = sst [smem:[#allocation13_spill]] %s3954_s18 }
  0x61   : > { %3716 = dma.done.wait (%p4452_p7), %s531_s21, 4096  }
  0x62   : > { %3718 = vsyncadd (%p4452_p7), %s531_s21, 4294963200  ;;  %p618_p8 = scmp.lt.s32.totalorder %s3837_s29, 2  ;;  %s4454_s5 = sld [smem:[#allocation16_spill]] }
  0x63   : > { %p3009_p11 = scmp.ne.s32.totalorder %s3837_s29, 0 }
  0x64   : > { %s3962_s0 = scalar_select %p618_p8, %s3837_s29, 2 }
  0x65   : > { %s4455_s15 = sld [smem:[#allocation14_spill]] (!%p3009_p11) }
  0x66   : > { %s3375_s20 = smul.u32 3, %s3962_s0  ;;  %s3139_s14 = sshll.u32 %s3962_s0, 6 }
  0x67   : > { %s641_s18 = scalar_lea.vmem %s4425_s8, %s3962_s0  ;;  %s3140_s28 = sshll.u32 %s3962_s0, 8 }
  0x68   : > { %s3977_s30 = scalar_lea.vmem %s4454_s5, %s3139_s14  ;;  %s3986_s11 = scalar_lea.vmem %s4421_s4, %s3375_s20 }
  0x69   : > { %s4000_s5 = scalar_lea.vmem %s4426_s9, %s3140_s28  ;;  %s3006_s16 = sshll.u32 %s3962_s0, 2 }
  0x6a   : > { %s4006_s20 = scalar_lea.vmem %s4427_s10, %s3006_s16  ;;  %s653_s26 = scalar_lea.vmem %s4429_s12, %s3962_s0 }
  0x6b   : > { %s3141_s17 = sshll.u32 %s3962_s0, 4  ;;  %663 = sbr.rel (%p3009_p11) target bundleno = 114 (0x72), region = 84  ;;  %v664_v0 = vld [vmem:[%s4455_s15] sm:$0xff] (!%p3009_p11)  ;;  %v665_v1 = vld [vmem:[%s4455_s15 + $0x8] sm:$0x3] (!%p3009_p11) }
  0x6c   : > { %s4016_s22 = scalar_lea.vmem %s4430_s13, %s3141_s17  ;;  %666 = vst [vmem:[#allocation2] sm:$0xff] (!%p3009_p11), %v664_v0  ;;  %667 = vst [vmem:[#allocation2 + $0x8] sm:$0x3] (!%p3009_p11), %v665_v1 }
  0x72 PF: > { %vm674_vm0 = vcmask 1041408   ;;  %v3441_v5 = vld [vmem:[%s3948_s23 + $0x4] ss:$12 sps:$4 sm:$0xff]   ;;  %v3443_v6 = vld [vmem:[%s3948_s23] ss:$12 sps:$4 sm:$0xff]   ;;  %v3741_v7 = vmov 0.0   ;;  %s4456_s24 = scalar_lea.vmem %s4418_s1, %s3962_s0  ;;  %s4457_s27 = scalar_lea.vmem %s4419_s2, %s3962_s0  ;;  %v749_v57 = vlaneseq }
  0x73   : > { %v669_v2 = vld [vmem:[#allocation2 + $0x8] sm:$0x3]  ;;  %v668_v4 = vld [vmem:[#allocation2] sm:$0xff]  ;;  %3236 = vmatprep.subr.bf16.mxu1 %v3741_v7  ;;  %v3445_v9 = vld [vmem:[%s3948_s23 + $0x1c] ss:$12 sps:$4 sm:$0xff]   ;;  %892 = vmatprep.subr.bf16.mxu0 %v3441_v5  ;;  %v3742_v34 = vmov 0   ;;  %s4458_s14 = scalar_lea.vmem %s4423_s6, %s3962_s0  ;;  %s4460_s29 = scalar_lea.vmem %s4424_s7, %s3962_s0 }
  0x74   : > { %v675_v3 = vsel %vm674_vm0, %v669_v2, 0.0  ;;  %v3444_v8 = vld [vmem:[%s3948_s23 + $0x8] ss:$12 sps:$4 sm:$0xff]   ;;  %893 = vmatpush1.bf16.msra.mxu0 %v3443_v6  ;;  %v3447_v19 = vld [vmem:[%s3948_s23 + $0x18] ss:$12 sps:$4 sm:$0xff]   ;;  %924 = vmatprep.mubr.bf16.mxu0 %v3742_v34  ;;  %vm3743_vm1 = vmmov 0  }
  0x75   : > { %676 = vadd.xlane.f32.xlu0 %v675_v3  ;;  %3237 = vmatpush3.bf16.msra.mxu1 %v3444_v8  ;;  %v3448_v20 = vld [vmem:[%s3948_s23 + $0x20] ss:$12 sps:$4 sm:$0xff]   ;;  %v3451_v22 = vld [vmem:[%s3948_s23 + $0x30] ss:$12 sps:$4 sm:$0xff]   ;;  %v3452_v23 = vld [vmem:[%s3948_s23 + $0x38] ss:$12 sps:$4 sm:$0xff]  }
  0x76   : > { %894 = vmatprep.subr.bf16.mxu0 %v3445_v9  ;;  %3238 = vmatprep.subr.bf16.mxu1 %v3741_v7  ;;  %v3449_v21 = vld [vmem:[%s3948_s23 + $0x34] ss:$12 sps:$4 sm:$0xff]   ;;  %v3453_v24 = vld [vmem:[%s3948_s23 + $0x4c] ss:$12 sps:$4 sm:$0xff]   ;;  %v3456_v26 = vld [vmem:[%s3948_s23 + $0x50] ss:$12 sps:$4 sm:$0xff]  }
  0x77   : > { %v3455_v25 = vld [vmem:[%s3948_s23 + $0x48] ss:$12 sps:$4 sm:$0xff]   ;;  %v3457_v27 = vld [vmem:[%s3948_s23 + $0x64] ss:$12 sps:$4 sm:$0xff]   ;;  %v3459_v28 = vld [vmem:[%s3948_s23 + $0x60] ss:$12 sps:$4 sm:$0xff]   ;;  %3252 = vmatprep.mubr.msk.bf16.mxu1 %vm3743_vm1, %v3741_v7 }
  0x78   : > { %895 = vmatpush1.bf16.msra.mxu0 %v3447_v19  ;;  %v3460_v29 = vld [vmem:[%s3948_s23 + $0x68] ss:$12 sps:$4 sm:$0xff]   ;;  %v3463_v31 = vld [vmem:[%s3948_s23 + $0x78] ss:$12 sps:$4 sm:$0xff]   ;;  %v3464_v32 = vld [vmem:[%s3948_s23 + $0x80] ss:$12 sps:$4 sm:$0xff]  }
  0x79   : > { %672 = vadd.xlane.f32.xlu0 %v668_v4  ;;  %3239 = vmatpush3.bf16.msra.mxu1 %v3448_v20  ;;  %v3461_v30 = vld [vmem:[%s3948_s23 + $0x7c] ss:$12 sps:$4 sm:$0xff]   ;;  %v3465_v33 = vld [vmem:[%s3948_s23 + $0x94] ss:$12 sps:$4 sm:$0xff]   ;;  %v3468_v36 = vld [vmem:[%s3948_s23 + $0x98] ss:$12 sps:$4 sm:$0xff]  }
  0x7a   : > { %3240 = vmatprep.subr.bf16.mxu1 %v3741_v7  ;;  %896 = vmatprep.subr.bf16.mxu0 %v3449_v21  ;;  %v3467_v35 = vld [vmem:[%s3948_s23 + $0x90] ss:$12 sps:$4 sm:$0xff]   ;;  %v3469_v37 = vld [vmem:[%s3948_s23 + $0xac] ss:$12 sps:$4 sm:$0xff]   ;;  %v3471_v38 = vld [vmem:[%s3948_s23 + $0xa8] ss:$12 sps:$4 sm:$0xff]  }
  0x7b   : > { %v3472_v39 = vld [vmem:[%s3948_s23 + $0xb0] ss:$12 sps:$4 sm:$0xff]   ;;  %v4088_v58 = vshrl.u32 %v749_v57, 7  ;;  %vm979_vm2 = vcmask 261120   ;;  %vm1044_vm3 = vcmask 1042432   ;;  %v3744_v21 = vmov 65535  }
  0x7c   : > { %897 = vmatpush1.bf16.msra.mxu0 %v3451_v22  ;;  %v3010_v48 = vld [vmem:[%s4456_s24] ss:$0 sm:$0xff]  ;;  %v1045_v22 = vsel %vm674_vm0, 4294967295, %v3744_v21  ;;  %vm1027_vm4 = vcmask 36864   ;;  %s3746_s17 = smov 32   ;;  %s3747_s25 = smov 64  }
  0x7d   : > { %3241 = vmatpush3.bf16.msra.mxu1 %v3452_v23  ;;  %898 = vmatprep.subr.bf16.mxu0 %v3453_v24  ;;  %v3011_v52 = vld [vmem:[%s4457_s27] ss:$0 sm:$0xff]  ;;  %v751_v59 = vsub.s32 0, %v4088_v58  ;;  %v759_v60 = vsub.s32 2, %v4088_v58  ;;  %v755_v62 = vsub.s32 1, %v4088_v58  ;;  %v4105_v23 = vsel %vm1044_vm3, %v1045_v22, 0 }
  0x7e   : > { %3242 = vmatprep.subr.bf16.mxu1 %v3741_v7  ;;  %v747_v61 = vld [vmem:[%s3986_s11] sm:$0x7]  ;;  %s3745_s11 = smov 96   ;;  %vm1040_vm5 = vcmask 39936   ;;  %vm1439_vm6 = vcmask 523264   ;;  %vm1441_vm7 = vcmask 785408  }
  0x7f   : > { %v752_v63 = vrot.slane %v747_v61, %v751_v59  ;;  %v760_v0 = vrot.slane %v747_v61, %v759_v60  ;;  %v756_v3 = vrot.slane %v747_v61, %v755_v62  ;;  %vm1920_vm8 = vcmask 1044480   ;;  %s4459_s21 = sld [smem:[#allocation13_spill]] }
  0x80   : > { %899 = vmatpush1.bf16.msra.mxu0 %v3455_v25 }
  0x81   : > { %3243 = vmatpush3.bf16.msra.mxu1 %v3456_v26  ;;  %900 = vmatprep.subr.bf16.mxu0 %v3457_v27 }
  0x82   : > { %3244 = vmatprep.subr.bf16.mxu1 %v3741_v7 }
  0x84   : > { %901 = vmatpush1.bf16.msra.mxu0 %v3459_v28 }
  0x85   : > { %3245 = vmatpush3.bf16.msra.mxu1 %v3460_v29  ;;  %902 = vmatprep.subr.bf16.mxu0 %v3461_v30 }
  0x86   : > { %3246 = vmatprep.subr.bf16.mxu1 %v3741_v7 }
  0x88   : > { %903 = vmatpush1.bf16.msra.mxu0 %v3463_v31 }
  0x89   : > { %3247 = vmatpush3.bf16.msra.mxu1 %v3464_v32  ;;  %904 = vmatprep.subr.bf16.mxu0 %v3465_v33 }
  0x8a   : > { %3248 = vmatprep.subr.bf16.mxu1 %v3741_v7 }
  0x8c   : > { %905 = vmatpush1.bf16.msra.mxu0 %v3467_v35 }
  0x8d   : > { %3249 = vmatpush3.bf16.msra.mxu1 %v3468_v36  ;;  %906 = vmatprep.subr.bf16.mxu0 %v3469_v37 }
  0x8e   : > { %3250 = vmatprep.subr.bf16.mxu1 %v3741_v7 }
  0x90   : > { %907 = vmatpush1.bf16.msra.mxu0 %v3471_v38 }
  0x91   : > { %3251 = vmatpush3.bf16.msra.mxu1 %v3472_v39  ;;  %3280 = vmatprep.subr.bf16.mxu0 %v3741_v7 }
  0x92   : > { %3256 = vmatprep.subr.bf16.mxu1 %v3741_v7 }
 0x102   : > { %v677_v10 = vpop.xlane.xlu0 %676 }
 0x103   : > { %v680_v11 = vmul.f32 0.0078125, %v677_v10 }
 0x105   : > { %v4032_v14 = vsub.f32 %v669_v2, %v680_v11 }
 0x106   : > { %v673_v12 = vpop.xlane.xlu0 %672 }
 0x107   : > { %v679_v13 = vmul.f32 0.0078125, %v673_v12  ;;  %v684_v17 = vmul.f32 %v4032_v14, %v4032_v14 }
 0x109   : > { %v4034_v15 = vsub.f32 %v668_v4, %v679_v13  ;;  %v687_v18 = vsel %vm674_vm0, %v684_v17, 0.0 }
 0x10b   : > { %v683_v16 = vmul.f32 %v4034_v15, %v4034_v15 }
 0x10d   : > { %685 = vadd.xlane.f32.xlu1 %v683_v16 }
 0x111   : > { %688 = vadd.xlane.f32.xlu1 %v687_v18 }
 0x19a   : > { %v686_v40 = vpop.xlane.xlu1 %685 }
 0x19b   : > { %v690_v41 = vmul.f32 0.0078125, %v686_v40 }
 0x19d   : > { %v692_v42 = vadd.f32 1e-05, %v690_v41 }
 0x19e   : > { %v689_v43 = vpop.xlane.xlu1 %688 }
 0x19f   : > { %3561 = vrsqrt.f32 %v692_v42  ;;  %v691_v44 = vmul.f32 0.0078125, %v689_v43 }
 0x1a1   : > { %v693_v45 = vadd.f32 1e-05, %v691_v44 }
 0x1a3   : > { %3563 = vrsqrt.f32 %v693_v45 }
 0x1a9   : > { %v3562_v46 = vpop.eup %3561 }
 0x1aa   : > { %v696_v47 = vmul.f32 %v3562_v46, %v4034_v15 }
 0x1ac   : > { %v704_v51 = vmul.f32 %v3010_v48, %v696_v47 }
 0x1ad   : > { %v3564_v49 = vpop.eup %3563 }
 0x1ae   : > { %v697_v50 = vmul.f32 %v3564_v49, %v4032_v14  ;;  %v712_v54 = vadd.f32 %v3011_v52, %v704_v51 }
 0x1b0   : > { %v705_v53 = vmul.f32 %v3010_v48, %v697_v50 }
 0x1b2   : > { %v713_v55 = vadd.f32 %v3011_v52, %v705_v53 }
 0x1b4   : > { %v714_v56 = vpack.c.bf16 %v713_v55, %v712_v54 }
 0x1b6   : > { %925 = vmatmul.mubr.bf16.vlgmr.msra.gmra.mrb[0].mxu0 %v714_v56  ;;  %3253 = vmatmul.mubr.bf16.vlgmr.msra.gmra.mrb[0].mxu1 %v714_v56 }
 0x1b7   : > { %3258 = vmatprep.mubr.msk.bf16.mxu1 %vm3743_vm1, %v3741_v7  ;;  %3282 = vmatprep.mubr.msk.bf16.mxu0 %vm3743_vm1, %v3741_v7 }
 0x289   : > { %v926_v1 = vpop.f32.mrb[0].mxu0  ;;  %v969_v2 = vpop.f32.mrb[0].mxu1 }
 0x28a   : > { %v928_v4 = vpop.f32.mrb[1].mxu0  ;;  %v3254_v5 = vpop.f32.mrb[1].mxu1  ;;  %v927_v9 = vadd.f32 %v926_v1, %v752_v63  ;;  %v970_v10 = vadd.f32 %v969_v2, %v760_v0 }
 0x28b   : > { %v930_v6 = vpop.f32.mrb[2].mxu0  ;;  %v972_v8 = vpop.f32.mrb[2].mxu1  ;;  %v929_v15 = vadd.f32 %v928_v4, %v756_v3 }
 0x28c   : > { %v931_v11 = vadd.f32 %v930_v6, %v752_v63  ;;  %v973_v12 = vadd.f32 %v972_v8, %v760_v0  ;;  %v932_v13 = vpop.f32.mrb[3].mxu0  ;;  %v3255_v14 = vpop.f32.mrb[3].mxu1 }
 0x28d   : > { %v933_v16 = vadd.f32 %v932_v13, %v756_v3 }
 0x28e   : > { %v976_v17 = vpack.c.bf16 %v931_v11, %v927_v9  ;;  %v4100_v18 = vpack.c.bf16 %v973_v12, %v970_v10 }
 0x28f   : > { %v977_v19 = vpack.c.bf16 %v933_v16, %v929_v15 }
 0x290   : > { %v1048_v24 = vand.u32 %v4105_v23, %v4100_v18  ;;  %v1443_v42 = vshrl.u32 %v976_v17, 16  ;;  %v1446_v43 = vshll.u32 %v976_v17, 16 }
 0x291   : > { %v984_v20 = vsel %vm979_vm2, %v977_v19, 0  ;;  %v1450_v31 = vshrl.u32 %v977_v19, 16  ;;  %v1453_v32 = vshll.u32 %v977_v19, 16 }
 0x292   : > { %3257 = vmatpush3.bf16.xpose.msra.mxu1 %v984_v20  ;;  %v1445_v44 = vrot.slane %v1443_v42, 2  ;;  %v1448_v45 = vrot.slane %v1446_v43, 3 }
 0x293   : > { %3262 = vmatprep.subr.bf16.mxu1 %v3741_v7  ;;  %v1452_v33 = vrot.slane %v1450_v31, 2  ;;  %v1455_v35 = vrot.slane %v1453_v32, 3 }
 0x294   : > { %v1449_v46 = vor.u32 %v1448_v45, %v1445_v44 }
 0x295   : > { %v1456_v36 = vor.u32 %v1455_v35, %v1452_v33 }
 0x297   : > { %v1461_v0 = vsel %vm979_vm2, %v1456_v36, 0 }
 0x299   : > { %3259 = vmatmul.mubr.msk.bf16.vlgmr.msra.gmra.mrb[4].mxu1 %vm979_vm2, %v976_v17 }
 0x29a   : > { %3263 = vmatpush3.bf16.msra.mxu1 %v1048_v24  ;;  %3264 = vmatprep.mubr.msk.bf16.mxu1 %vm3743_vm1, %v3741_v7 }
 0x29b   : > { %3268 = vmatprep.subr.bf16.mxu1 %v3741_v7 }
 0x36c   : > { %v1020_v25 = vpop.f32.mrb[4].mxu1 }
 0x36d   : > { %v1026_v26 = vmul.f32 0.17677669, %v1020_v25  ;;  %v3260_v27 = vpop.f32.mrb[5].mxu1 }
 0x36e   : > { %v1023_v28 = vpop.f32.mrb[6].mxu1 }
 0x36f   : > { %v3261_v29 = vpop.f32.mrb[7].mxu1  ;;  %v1028_v30 = vsel %vm1027_vm4, %v1026_v26, -inf }
 0x370   : > { %1029 = vmax.xlane.f32.xlu0 %v1028_v30 }
 0x386   : > { %1094 = vrot.lane.b32.xlu0 %v977_v19, %s3745_s11 }
 0x38a   : > { %1317 = vrot.lane.b32.xlu0 %v977_v19, %s3746_s17 }
 0x38e   : > { %1571 = vrot.lane.b32.xlu0 %v1456_v36, %s3745_s11 }
 0x392   : > { %1682 = vrot.lane.b32.xlu0 %v1456_v36, %s3747_s25 }
 0x396   : > { %1793 = vrot.lane.b32.xlu0 %v1456_v36, %s3746_s17 }
 0x3fd   : > { %v1030_v37 = vpop.xlane.xlu0 %1029 }
 0x3fe   : > { %v1031_v38 = vsub.f32 %v1026_v26, %v1030_v37 }
 0x400   : > { %v1032_v39 = vmul.f32 1.442695, %v1031_v38 }
 0x401   : > { %v1095_v49 = vpop.permute.xlu0 %1094 }
 0x402   : > { %3565 = vpow2.f32 %v1032_v39  ;;  %v1100_v56 = vsel %vm979_vm2, %v1095_v49, 0 }
 0x405   : > { %v1318_v54 = vpop.permute.xlu0 %1317 }
 0x406   : > { %v1323_v61 = vsel %vm979_vm2, %v1318_v54, 0 }
 0x409   : > { %v1572_v1 = vpop.permute.xlu0 %1571 }
 0x40a   : > { %v1577_v2 = vsel %vm979_vm2, %v1572_v1, 0 }
 0x40c   : > { %v3566_v40 = vpop.eup %3565 }
 0x40d   : > { %v1034_v41 = vsel %vm1027_vm4, %v3566_v40, 0.0  ;;  %v1683_v3 = vpop.permute.xlu0 %1682 }
 0x40e   : > { %1035 = vadd.xlane.f32.xlu1 %v1034_v41  ;;  %v1688_v5 = vsel %vm979_vm2, %v1683_v3, 0 }
 0x411   : > { %v1794_v6 = vpop.permute.xlu0 %1793 }
 0x412   : > { %v1799_v9 = vsel %vm979_vm2, %v1794_v6, 0 }
 0x41f   : > { %1091 = vrot.lane.b32.xlu1 %v976_v17, %s3745_s11 }
 0x423   : > { %1206 = vrot.lane.b32.xlu1 %v977_v19, %s3747_s25 }
 0x427   : > { %1204 = vrot.lane.b32.xlu1 %v976_v17, %s3747_s25 }
 0x42b   : > { %1315 = vrot.lane.b32.xlu1 %v976_v17, %s3746_s17 }
 0x42f   : > { %1569 = vrot.lane.b32.xlu1 %v1449_v46, %s3745_s11 }
 0x433   : > { %1680 = vrot.lane.b32.xlu1 %v1449_v46, %s3747_s25 }
 0x437   : > { %1791 = vrot.lane.b32.xlu1 %v1449_v46, %s3746_s17 }
 0x49b   : > { %v1036_v47 = vpop.xlane.xlu1 %1035 }
 0x49c   : > { %3567 = vrcp.f32 %v1036_v47 }
 0x49f   : > { %v1092_v48 = vpop.permute.xlu1 %1091 }
 0x4a3   : > { %v1207_v50 = vpop.permute.xlu1 %1206 }
 0x4a4   : > { %v1212_v51 = vsel %vm979_vm2, %v1207_v50, 0 }
 0x4a5   : > { %3281 = vmatpush3.bf16.xpose.msra.mxu0 %v1212_v51 }
 0x4a6   : > { %v3568_v52 = vpop.eup %3567  ;;  %3292 = vmatprep.subr.bf16.mxu0 %v3741_v7 }
 0x4a7   : > { %v1038_v53 = vmul.f32 %v3568_v52, %v3566_v40  ;;  %v1205_v57 = vpop.permute.xlu1 %1204 }
 0x4a9   : > { %v1039_v55 = vpack.c.bf16 %v1038_v53, %v1038_v53 }
 0x4ab   : > { %3265 = vmatmul.mubr.msk.bf16.vlgmr.msra.gmra.mrb[8].mxu1 %vm1040_vm5, %v1039_v55  ;;  %v1316_v63 = vpop.permute.xlu1 %1315 }
 0x4ac   : > { %3269 = vmatpush3.bf16.xpose.msra.mxu1 %v1100_v56  ;;  %3283 = vmatmul.mubr.msk.bf16.vlgmr.msra.gmra.mrb[4].mxu0 %vm979_vm2, %v1205_v57 }
 0x4ad   : > { %3293 = vmatpush3.bf16.xpose.msra.mxu0 %v1323_v61  ;;  %3270 = vmatprep.mubr.msk.bf16.mxu1 %vm3743_vm1, %v3741_v7 }
 0x4ae   : > { %3294 = vmatprep.mubr.msk.bf16.mxu0 %vm3743_vm1, %v3741_v7  ;;  %3304 = vmatprep.subr.bf16.mxu0 %v3741_v7 }
 0x4af   : > { %3274 = vmatprep.subr.bf16.mxu1 %v3741_v7  ;;  %v1570_v4 = vpop.permute.xlu1 %1569 }
 0x4b3   : > { %3271 = vmatmul.mubr.msk.bf16.vlgmr.msra.gmra.mrb[12].mxu1 %vm979_vm2, %v1092_v48  ;;  %v1681_v8 = vpop.permute.xlu1 %1680 }
 0x4b4   : > { %3295 = vmatmul.mubr.msk.bf16.vlgmr.msra.gmra.mrb[8].mxu0 %vm979_vm2, %v1316_v63  ;;  %3276 = vmatprep.mubr.msk.bf16.mxu1 %vm3743_vm1, %v3741_v7 }
 0x4b5   : > { %3305 = vmatpush3.bf16.xpose.msra.mxu0 %v1461_v0  ;;  %3306 = vmatprep.mubr.msk.bf16.mxu0 %vm3743_vm1, %v3741_v7 }
 0x4b6   : > { %3316 = vmatprep.subr.bf16.mxu0 %v3741_v7 }
 0x4b7   : > { %v1792_v10 = vpop.permute.xlu1 %1791 }
 0x4bc   : > { %3307 = vmatmul.mubr.msk.bf16.vlgmr.msra.gmra.mrb[12].mxu0 %vm979_vm2, %v1449_v46 }
 0x4bd   : > { %3317 = vmatpush3.bf16.xpose.msra.mxu0 %v1577_v2  ;;  %3318 = vmatprep.mubr.msk.bf16.mxu0 %vm3743_vm1, %v3741_v7 }
 0x4be   : > { %3328 = vmatprep.subr.bf16.mxu0 %v3741_v7 }
 0x4c4   : > { %3319 = vmatmul.mubr.msk.bf16.vlgmr.msra.gmra.mrb[16].mxu0 %vm979_vm2, %v1570_v4 }
 0x4c5   : > { %3329 = vmatpush3.bf16.xpose.msra.mxu0 %v1688_v5  ;;  %3330 = vmatprep.mubr.msk.bf16.mxu0 %vm3743_vm1, %v3741_v7 }
 0x4c6   : > { %3340 = vmatprep.subr.bf16.mxu0 %v3741_v7 }
 0x4cc   : > { %3331 = vmatmul.mubr.msk.bf16.vlgmr.msra.gmra.mrb[20].mxu0 %vm979_vm2, %v1681_v8 }
 0x4cd   : > { %3341 = vmatpush3.bf16.xpose.msra.mxu0 %v1799_v9  ;;  %3342 = vmatprep.mubr.msk.bf16.mxu0 %vm3743_vm1, %v3741_v7 }
 0x4ce   : > { %3352 = vmatprep.subr.bf16.mxu0 %v3741_v7 }
 0x4d4   : > { %3343 = vmatmul.mubr.msk.bf16.vlgmr.msra.gmra.mrb[24].mxu0 %vm979_vm2, %v1792_v10 }
 0x4d5   : > { %3368 = vmatprep.mubr.msk.bf16.mxu0 %vm3743_vm1, %v3741_v7 }
 0x57e   : > { %v4165_v11 = vpop.f32.mrb[8].mxu1 }
 0x57f   : > { %v3266_v12 = vpop.f32.mrb[9].mxu1  ;;  %v1248_v13 = vpop.f32.mrb[4].mxu0 }
 0x580   : > { %v1254_v14 = vmul.f32 0.17677669, %v1248_v13  ;;  %v1087_v15 = vpop.f32.mrb[10].mxu1  ;;  %v3284_v16 = vpop.f32.mrb[5].mxu0 }
 0x581   : > { %v3267_v17 = vpop.f32.mrb[11].mxu1  ;;  %v1251_v19 = vpop.f32.mrb[6].mxu0 }
 0x582   : > { %v3285_v20 = vpop.f32.mrb[7].mxu0  ;;  %v1255_v21 = vsel %vm1027_vm4, %v1254_v14, -inf }
 0x583   : > { %1256 = vmax.xlane.f32.xlu1 %v1255_v21 }
 0x586   : > { %v1136_v22 = vpop.f32.mrb[12].mxu1 }
 0x587   : > { %v1142_v24 = vmul.f32 0.17677669, %v1136_v22  ;;  %v3272_v25 = vpop.f32.mrb[13].mxu1  ;;  %v1359_v26 = vpop.f32.mrb[8].mxu0 }
 0x588   : > { %v1139_v27 = vpop.f32.mrb[14].mxu1  ;;  %v3296_v28 = vpop.f32.mrb[9].mxu0  ;;  %v1365_v29 = vmul.f32 0.17677669, %v1359_v26 }
 0x589   : > { %v3273_v30 = vpop.f32.mrb[15].mxu1  ;;  %v1362_v31 = vpop.f32.mrb[10].mxu0  ;;  %v1143_v32 = vsel %vm1027_vm4, %v1142_v24, -inf }
 0x58a   : > { %v3297_v33 = vpop.f32.mrb[11].mxu0  ;;  %1144 = vmax.xlane.f32.xlu0 %v1143_v32  ;;  %v1366_v35 = vsel %vm1027_vm4, %v1365_v29, -inf }
 0x58e   : > { %1367 = vmax.xlane.f32.xlu0 %v1366_v35 }
 0x58f   : > { %v1497_v36 = vpop.f32.mrb[12].mxu0 }
 0x590   : > { %v1503_v37 = vmul.f32 0.17677669, %v1497_v36  ;;  %v3308_v38 = vpop.f32.mrb[13].mxu0 }
 0x591   : > { %v1500_v39 = vpop.f32.mrb[14].mxu0 }
 0x592   : > { %v3309_v40 = vpop.f32.mrb[15].mxu0  ;;  %v1504_v41 = vsel %vm1027_vm4, %v1503_v37, -inf }
 0x593   : > { %1505 = vmax.xlane.f32.xlu0 %v1504_v41  ;;  %v1516_v40 = vshrl.u32 %v4100_v18, 16  ;;  %v1519_v41 = vshll.u32 %v4100_v18, 16 }
 0x597   : > { %v1613_v42 = vpop.f32.mrb[16].mxu0 }
 0x598   : > { %v1619_v43 = vmul.f32 0.17677669, %v1613_v42  ;;  %v3320_v44 = vpop.f32.mrb[17].mxu0  ;;  %v1518_v42 = vrot.slane %v1516_v40, 2 }
 0x599   : > { %v1616_v45 = vpop.f32.mrb[18].mxu0 }
 0x59a   : > { %v3321_v46 = vpop.f32.mrb[19].mxu0  ;;  %v1620_v47 = vsel %vm1027_vm4, %v1619_v43, -inf }
 0x59b   : > { %1621 = vmax.xlane.f32.xlu0 %v1620_v47 }
 0x59f   : > { %v1724_v48 = vpop.f32.mrb[20].mxu0 }
 0x5a0   : > { %v1730_v49 = vmul.f32 0.17677669, %v1724_v48  ;;  %v3332_v50 = vpop.f32.mrb[21].mxu0 }
 0x5a1   : > { %v1727_v51 = vpop.f32.mrb[22].mxu0 }
 0x5a2   : > { %v3333_v52 = vpop.f32.mrb[23].mxu0  ;;  %v1731_v53 = vsel %vm1027_vm4, %v1730_v49, -inf }
 0x5a3   : > { %1732 = vmax.xlane.f32.xlu1 %v1731_v53 }
 0x5a7   : > { %v1835_v54 = vpop.f32.mrb[24].mxu0 }
 0x5a8   : > { %v1841_v55 = vmul.f32 0.17677669, %v1835_v54  ;;  %v3344_v56 = vpop.f32.mrb[25].mxu0 }
 0x5a9   : > { %v1838_v57 = vpop.f32.mrb[26].mxu0 }
 0x5aa   : > { %v3345_v61 = vpop.f32.mrb[27].mxu0  ;;  %v1842_v63 = vsel %vm1027_vm4, %v1841_v55, -inf }
 0x5ab   : > { %1843 = vmax.xlane.f32.xlu0 %v1842_v63 }
 0x610   : > { %v1257_v0 = vpop.xlane.xlu1 %1256 }
 0x611   : > { %v1258_v1 = vsub.f32 %v1254_v14, %v1257_v0 }
 0x613   : > { %v1259_v2 = vmul.f32 1.442695, %v1258_v1 }
 0x615   : > { %3569 = vpow2.f32 %v1259_v2 }
 0x617   : > { %v1145_v3 = vpop.xlane.xlu0 %1144 }
 0x618   : > { %v1146_v9 = vsub.f32 %v1142_v24, %v1145_v3 }
 0x61a   : > { %v1147_v15 = vmul.f32 1.442695, %v1146_v9 }
 0x61b   : > { %v1368_v4 = vpop.xlane.xlu0 %1367 }
 0x61c   : > { %v1369_v5 = vsub.f32 %v1365_v29, %v1368_v4 }
 0x61e   : > { %v1370_v6 = vmul.f32 1.442695, %v1369_v5 }
 0x61f   : > { %v4174_v8 = vpop.eup %3569 }
 0x620   : > { %3571 = vpow2.f32 %v1370_v6  ;;  %v1506_v10 = vpop.xlane.xlu0 %1505  ;;  %v1261_v12 = vsel %vm1027_vm4, %v4174_v8, 0.0 }
 0x621   : > { %v1507_v13 = vsub.f32 %v1503_v37, %v1506_v10  ;;  %1262 = vadd.xlane.f32.xlu0 %v1261_v12 }
 0x623   : > { %v1508_v16 = vmul.f32 1.442695, %v1507_v13 }
 0x625   : > { %3573 = vpow2.f32 %v1508_v16 }
 0x626   : > { %3575 = vpow2.f32 %v1147_v15 }
 0x628   : > { %v1622_v24 = vpop.xlane.xlu0 %1621 }
 0x629   : > { %v1623_v31 = vsub.f32 %v1619_v43, %v1622_v24  ;;  %v1521_v43 = vrot.slane %v1519_v41, 3 }
 0x62a   : > { %v4178_v14 = vpop.eup %3571 }
 0x62b   : > { %v1372_v17 = vsel %vm1027_vm4, %v4178_v14, 0.0  ;;  %v1624_v33 = vmul.f32 1.442695, %v1623_v31  ;;  %v1522_v44 = vor.u32 %v1521_v43, %v1518_v42 }
 0x62c   : > { %1373 = vadd.xlane.f32.xlu1 %v1372_v17 }
 0x62d   : > { %v1527_v4 = vand.u32 %v1522_v44, %v4105_v23 }
 0x62f   : > { %v4182_v19 = vpop.eup %3573 }
 0x630   : > { %v1510_v20 = vsel %vm1027_vm4, %v4182_v19, 0.0  ;;  %v3576_v21 = vpop.eup %3575  ;;  %v1733_v25 = vpop.xlane.xlu1 %1732 }
 0x631   : > { %1511 = vadd.xlane.f32.xlu1 %v1510_v20  ;;  %v1149_v22 = vsel %vm1027_vm4, %v3576_v21, 0.0  ;;  %v1734_v26 = vsub.f32 %v1730_v49, %v1733_v25 }
 0x633   : > { %v1735_v28 = vmul.f32 1.442695, %v1734_v26 }
 0x635   : > { %1150 = vadd.xlane.f32.xlu1 %v1149_v22  ;;  %3577 = vpow2.f32 %v1735_v28 }
 0x637   : > { %1156 = vrot.lane.b32.xlu0 %v4100_v18, %s3745_s11 }
 0x638   : > { %v1844_v27 = vpop.xlane.xlu0 %1843 }
 0x639   : > { %v1845_v29 = vsub.f32 %v1841_v55, %v1844_v27 }
 0x63b   : > { %1378 = vrot.lane.b32.xlu0 %v4100_v18, %s3746_s17  ;;  %v1846_v30 = vmul.f32 1.442695, %v1845_v29  ;;  %v3473_v29 = vld [vmem:[%s3977_s30] sm:$0xff]  }
 0x63c   : > { %3353 = vmatpush3.bf16.msra.mxu0 %v3473_v29 }
 0x63d   : > { %3579 = vpow2.f32 %v1846_v30  ;;  %v3474_v30 = vld [vmem:[%s3977_s30 + $0x8] sm:$0xff]   ;;  %3354 = vmatprep.subr.bf16.mxu0 %v3741_v7 }
 0x63e   : > { %3581 = vpow2.f32 %v1624_v33 }
 0x63f   : > { %v4193_v32 = vpop.eup %3577 }
 0x640   : > { %v1737_v35 = vsel %vm1027_vm4, %v4193_v32, 0.0  ;;  %3355 = vmatpush3.bf16.msra.mxu0 %v3474_v30  ;;  %v3633_v30 = vld [vmem:[#allocation2] sm:$0xff] }
 0x641   : > { %3356 = vmatprep.subr.bf16.mxu0 %v3741_v7 }
 0x646   : > { %1267 = vrot.lane.b32.xlu1 %v4100_v18, %s3747_s25 }
 0x647   : > { %v4197_v36 = vpop.eup %3579 }
 0x648   : > { %v1848_v37 = vsel %vm1027_vm4, %v4197_v36, 0.0  ;;  %v4201_v38 = vpop.eup %3581 }
 0x649   : > { %v1626_v39 = vsel %vm1027_vm4, %v4201_v38, 0.0 }
 0x65a   : > { %1738 = vadd.xlane.f32.xlu0 %v1737_v35 }
 0x65e   : > { %1849 = vadd.xlane.f32.xlu0 %v1848_v37 }
 0x66a   : > { %1627 = vadd.xlane.f32.xlu1 %v1626_v39 }
 0x674   : > { %1743 = vrot.lane.b32.xlu0 %v1522_v44, %s3747_s25 }
 0x67b   : > { %1632 = vrot.lane.b32.xlu1 %v1522_v44, %s3745_s11 }
 0x67f   : > { %1854 = vrot.lane.b32.xlu1 %v1522_v44, %s3746_s17 }
 0x6ae   : > { %v1263_v45 = vpop.xlane.xlu0 %1262 }
 0x6b2   : > { %v1157_v46 = vpop.permute.xlu0 %1156 }
 0x6b3   : > { %v1162_v47 = vand.u32 %v1157_v46, %v4105_v23 }
 0x6b5   : > { %3275 = vmatpush3.bf16.msra.mxu1 %v1162_v47 }
 0x6b6   : > { %3286 = vmatprep.subr.bf16.mxu1 %v3741_v7  ;;  %v1379_v57 = vpop.permute.xlu0 %1378 }
 0x6b7   : > { %v1384_v0 = vand.u32 %v1379_v57, %v4105_v23 }
 0x6b9   : > { %v1374_v48 = vpop.xlane.xlu1 %1373 }
 0x6be   : > { %v1512_v49 = vpop.xlane.xlu1 %1511 }
 0x6c2   : > { %v1151_v50 = vpop.xlane.xlu1 %1150 }
 0x6c3   : > { %3583 = vrcp.f32 %v1151_v50  ;;  %v3478_v50 = vld [vmem:[%s3977_s30 + $0x28] sm:$0xff]  }
 0x6c4   : > { %3585 = vrcp.f32 %v1263_v45 }
 0x6c5   : > { %3587 = vrcp.f32 %v1374_v48  ;;  %v3476_v48 = vld [vmem:[%s3977_s30 + $0x18] sm:$0xff]  }
 0x6c6   : > { %v1268_v52 = vpop.permute.xlu1 %1267  ;;  %3589 = vrcp.f32 %v1512_v49  ;;  %v3477_v49 = vld [vmem:[%s3977_s30 + $0x20] sm:$0xff]  }
 0x6c7   : > { %v1273_v55 = vand.u32 %v1268_v52, %v4105_v23 }
 0x6cd   : > { %v3584_v18 = vpop.eup %3583 }
 0x6ce   : > { %v1153_v51 = vmul.f32 %v3584_v18, %v3576_v21  ;;  %v3586_v54 = vpop.eup %3585 }
 0x6cf   : > { %v1265_v56 = vmul.f32 %v3586_v54, %v4174_v8  ;;  %v3588_v63 = vpop.eup %3587  ;;  %v3479_v54 = vld [vmem:[%s3977_s30 + $0x30] sm:$0xff]  }
 0x6d0   : > { %v1154_v53 = vpack.c.bf16 %v1153_v51, %v1153_v51  ;;  %v1376_v1 = vmul.f32 %v3588_v63, %v4178_v14  ;;  %v3590_v3 = vpop.eup %3589 }
 0x6d1   : > { %v1266_v61 = vpack.c.bf16 %v1265_v56, %v1265_v56  ;;  %v1514_v5 = vmul.f32 %v3590_v3, %v4182_v19  ;;  %v3480_v56 = vld [vmem:[%s3977_s30 + $0x38] sm:$0xff]  }
 0x6d2   : > { %3277 = vmatmul.mubr.msk.bf16.vlgmr.msra.gmra.mrb[16].mxu1 %vm1040_vm5, %v1154_v53  ;;  %v1377_v2 = vpack.c.bf16 %v1376_v1, %v1376_v1 }
 0x6d3   : > { %3287 = vmatpush3.bf16.msra.mxu1 %v1273_v55  ;;  %3288 = vmatprep.mubr.msk.bf16.mxu1 %vm3743_vm1, %v3741_v7  ;;  %v1515_v6 = vpack.c.bf16 %v1514_v5, %v1514_v5 }
 0x6d4   : > { %3298 = vmatprep.subr.bf16.mxu1 %v3741_v7 }
 0x6da   : > { %3289 = vmatmul.mubr.msk.bf16.vlgmr.msra.gmra.mrb[20].mxu1 %vm1040_vm5, %v1266_v61 }
 0x6db   : > { %3299 = vmatpush3.bf16.msra.mxu1 %v1384_v0  ;;  %3300 = vmatprep.mubr.msk.bf16.mxu1 %vm3743_vm1, %v3741_v7 }
 0x6dc   : > { %3310 = vmatprep.subr.bf16.mxu1 %v3741_v7 }
 0x6e2   : > { %3301 = vmatmul.mubr.msk.bf16.vlgmr.msra.gmra.mrb[24].mxu1 %vm1040_vm5, %v1377_v2 }
 0x6e3   : > { %3311 = vmatpush3.bf16.msra.mxu1 %v1527_v4  ;;  %3312 = vmatprep.mubr.msk.bf16.mxu1 %vm3743_vm1, %v3741_v7 }
 0x6e4   : > { %3322 = vmatprep.subr.bf16.mxu1 %v3741_v7 }
 0x6e7   : > { %v1739_v8 = vpop.xlane.xlu0 %1738 }
 0x6ea   : > { %3313 = vmatmul.mubr.msk.bf16.vlgmr.msra.gmra.mrb[28].mxu1 %vm1040_vm5, %v1515_v6 }
 0x6eb   : > { %3324 = vmatprep.mubr.msk.bf16.mxu1 %vm3743_vm1, %v3741_v7  ;;  %v1850_v13 = vpop.xlane.xlu0 %1849 }
 0x6ef   : > { %v1744_v16 = vpop.permute.xlu0 %1743 }
 0x6f0   : > { %v1749_v20 = vand.u32 %v1744_v16, %v4105_v23 }
 0x6f7   : > { %v1628_v9 = vpop.xlane.xlu1 %1627 }
 0x6f8   : > { %3591 = vrcp.f32 %v1628_v9 }
 0x6f9   : > { %3593 = vrcp.f32 %v1739_v8 }
 0x6fa   : > { %3595 = vrcp.f32 %v1850_v13 }
 0x6fb   : > { %v1633_v10 = vpop.permute.xlu1 %1632 }
 0x6fc   : > { %v1638_v12 = vand.u32 %v1633_v10, %v4105_v23 }
 0x6fe   : > { %3323 = vmatpush3.bf16.msra.mxu1 %v1638_v12 }
 0x6ff   : > { %3334 = vmatprep.subr.bf16.mxu1 %v3741_v7  ;;  %v1855_v22 = vpop.permute.xlu1 %1854 }
 0x700   : > { %v1860_v26 = vand.u32 %v1855_v22, %v4105_v23  ;;  %v3475_v23 = vld [vmem:[%s3977_s30 + $0x10] sm:$0xff]  }
 0x701   : > { %3357 = vmatpush3.bf16.msra.mxu0 %v3475_v23 }
 0x702   : > { %v3592_v15 = vpop.eup %3591  ;;  %3358 = vmatprep.subr.bf16.mxu0 %v3741_v7 }
 0x703   : > { %v1630_v14 = vmul.f32 %v3592_v15, %v4201_v38  ;;  %v3594_v19 = vpop.eup %3593 }
 0x704   : > { %v1741_v21 = vmul.f32 %v3594_v19, %v4193_v32  ;;  %v3596_v25 = vpop.eup %3595 }
 0x705   : > { %v1631_v17 = vpack.c.bf16 %v1630_v14, %v1630_v14  ;;  %v1852_v27 = vmul.f32 %v3596_v25, %v4197_v36  ;;  %3359 = vmatpush3.bf16.msra.mxu0 %v3476_v48 }
 0x706   : > { %v1742_v24 = vpack.c.bf16 %v1741_v21, %v1741_v21  ;;  %3360 = vmatprep.subr.bf16.mxu0 %v3741_v7 }
 0x707   : > { %3325 = vmatmul.mubr.msk.bf16.vlgmr.msra.gmra.mrb[32].mxu1 %vm1040_vm5, %v1631_v17  ;;  %v1853_v28 = vpack.c.bf16 %v1852_v27, %v1852_v27 }
 0x708   : > { %3335 = vmatpush3.bf16.msra.mxu1 %v1749_v20  ;;  %3336 = vmatprep.mubr.msk.bf16.mxu1 %vm3743_vm1, %v3741_v7 }
 0x709   : > { %3346 = vmatprep.subr.bf16.mxu1 %v3741_v7  ;;  %3361 = vmatpush3.bf16.msra.mxu0 %v3477_v49 }
 0x70a   : > { %3362 = vmatprep.subr.bf16.mxu0 %v3741_v7 }
 0x70d   : > { %3363 = vmatpush3.bf16.msra.mxu0 %v3478_v50 }
 0x70e   : > { %3364 = vmatprep.subr.bf16.mxu0 %v3741_v7 }
 0x70f   : > { %3337 = vmatmul.mubr.msk.bf16.vlgmr.msra.gmra.mrb[36].mxu1 %vm1040_vm5, %v1742_v24 }
 0x710   : > { %3347 = vmatpush3.bf16.msra.mxu1 %v1860_v26  ;;  %3348 = vmatprep.mubr.msk.bf16.mxu1 %vm3743_vm1, %v3741_v7 }
 0x711   : > { %3365 = vmatpush3.bf16.msra.mxu0 %v3479_v54  ;;  %v3493_v54 = vld [vmem:[%s4000_s5 + $0x40] ss:$16 sps:$4 sm:$0xff]  }
 0x712   : > { %3366 = vmatprep.subr.bf16.mxu0 %v3741_v7 }
 0x715   : > { %3367 = vmatpush3.bf16.msra.mxu0 %v3480_v56  ;;  %v3501_v56 = vld [vmem:[%s4000_s5 + $0x64] ss:$16 sps:$4 sm:$0xff]  }
 0x717   : > { %3349 = vmatmul.mubr.msk.bf16.vlgmr.msra.gmra.mrb[40].mxu1 %vm1040_vm5, %v1853_v28 }
 0x718   : > { %2326 = vmatprep.mubr.bf16.mxu1 %v3742_v34 }
 0x7a5   : > { %v1198_v31 = vpop.f32.mrb[16].mxu1 }
 0x7a6   : > { %v3278_v32 = vpop.f32.mrb[17].mxu1 }
 0x7a7   : > { %v1201_v33 = vpop.f32.mrb[18].mxu1  ;;  %v3634_v32 = vld [vmem:[#allocation2 + $0x8] sm:$0x3] }
 0x7a8   : > { %v3279_v35 = vpop.f32.mrb[19].mxu1 }
 0x7ad   : > { %v1309_v36 = vpop.f32.mrb[20].mxu1 }
 0x7ae   : > { %v3290_v37 = vpop.f32.mrb[21].mxu1 }
 0x7af   : > { %v1312_v38 = vpop.f32.mrb[22].mxu1  ;;  %v3483_v37 = vld [vmem:[%s4000_s5 + $0x4] ss:$16 sps:$4 sm:$0xff]  }
 0x7b0   : > { %v3291_v39 = vpop.f32.mrb[23].mxu1  ;;  %v3484_v38 = vld [vmem:[%s4000_s5 + $0x8] ss:$16 sps:$4 sm:$0xff]   ;;  %2294 = vmatprep.subr.bf16.mxu1 %v3483_v37  ;;  %v3530_v37 = vld [vmem:[%s4459_s21 + $0xc0] sm:$0xff]  }
 0x7b1   : > { %v3486_v39 = vld [vmem:[%s4000_s5 + $0xc] ss:$16 sps:$4 sm:$0xff]  }
 0x7b2   : > { %2337 = vmatprep.subr.bf16.mxu0 %v3486_v39  ;;  %v3532_v39 = vld [vmem:[%s4459_s21 + $0x80] sm:$0xff]  }
 0x7b5   : > { %v1420_v40 = vpop.f32.mrb[24].mxu1 }
 0x7b6   : > { %v3302_v41 = vpop.f32.mrb[25].mxu1 }
 0x7b7   : > { %v1423_v42 = vpop.f32.mrb[26].mxu1  ;;  %v3492_v41 = vld [vmem:[%s4000_s5 + $0x2c] ss:$16 sps:$4 sm:$0xff]  }
 0x7b8   : > { %v3303_v43 = vpop.f32.mrb[27].mxu1  ;;  %v3487_v42 = vld [vmem:[%s4000_s5 + $0x20] ss:$16 sps:$4 sm:$0xff]  }
 0x7b9   : > { %v3490_v43 = vld [vmem:[%s4000_s5 + $0x28] ss:$16 sps:$4 sm:$0xff]  }
 0x7bd   : > { %v1563_v44 = vpop.f32.mrb[28].mxu1 }
 0x7be   : > { %v3314_v45 = vpop.f32.mrb[29].mxu1 }
 0x7bf   : > { %v1566_v46 = vpop.f32.mrb[30].mxu1 }
 0x7c0   : > { %v3315_v47 = vpop.f32.mrb[31].mxu1 }
 0x7da   : > { %v1674_v18 = vpop.f32.mrb[32].mxu1 }
 0x7db   : > { %v3431_v51 = vpack.i.bf16 %v1198_v31, %v1674_v18  ;;  %v3326_v52 = vpop.f32.mrb[33].mxu1 }
 0x7dc   : > { %v1677_v53 = vpop.f32.mrb[34].mxu1  ;;  %v3495_v52 = vld [vmem:[%s4000_s5 + $0x44] ss:$16 sps:$4 sm:$0xff]  }
 0x7dd   : > { %3432 = vrot.lane.b32.xlu1 %v3431_v51, %s3746_s17  ;;  %v3327_v55 = vpop.f32.mrb[35].mxu1  ;;  %v3498_v53 = vld [vmem:[%s4000_s5 + $0x4c] ss:$16 sps:$4 sm:$0xff]  }
 0x7de   : > { %v3496_v55 = vld [vmem:[%s4000_s5 + $0x48] ss:$16 sps:$4 sm:$0xff]  }
 0x7e2   : > { %v1785_v57 = vpop.f32.mrb[36].mxu1 }
 0x7e3   : > { %v3436_v61 = vpack.i.bf16 %v1309_v36, %v1785_v57  ;;  %v3338_v63 = vpop.f32.mrb[37].mxu1  ;;  %v3481_v36 = vld [vmem:[%s4000_s5] ss:$16 sps:$4 sm:$0xff]   ;;  %v3504_v57 = vld [vmem:[%s4000_s5 + $0x6c] ss:$16 sps:$4 sm:$0xff]  }
 0x7e4   : > { %v1788_v0 = vpop.f32.mrb[38].mxu1  ;;  %2295 = vmatpush1.bf16.msra.mxu1 %v3481_v36  ;;  %v3502_v63 = vld [vmem:[%s4000_s5 + $0x68] ss:$16 sps:$4 sm:$0xff]   ;;  %v3529_v36 = vld [vmem:[%s4459_s21 + $0x40] sm:$0xff]  }
 0x7e5   : > { %3437 = vrot.lane.b32.xlu1 %v3436_v61, %s3747_s25  ;;  %v3339_v1 = vpop.f32.mrb[39].mxu1  ;;  %v3499_v61 = vld [vmem:[%s4000_s5 + $0x60] ss:$16 sps:$4 sm:$0xff]   ;;  %v3507_v0 = vld [vmem:[%s4000_s5 + $0x84] ss:$16 sps:$4 sm:$0xff]  }
 0x7e6   : > { %v3510_v1 = vld [vmem:[%s4000_s5 + $0x8c] ss:$16 sps:$4 sm:$0xff]  }
 0x7e9   : > { %1435 = vrot.lane.b32.xlu1 %v1420_v40, %s3745_s11  ;;  %v3489_v40 = vld [vmem:[%s4000_s5 + $0x24] ss:$16 sps:$4 sm:$0xff]  }
 0x7ea   : > { %v1896_v2 = vpop.f32.mrb[40].mxu1  ;;  %2296 = vmatprep.subr.bf16.mxu1 %v3489_v40  ;;  %v3533_v40 = vld [vmem:[%s4459_s21 + $0x48] sm:$0xff]  }
 0x7eb   : > { %1911 = vrot.lane.b32.xlu0 %v1896_v2, %s3745_s11  ;;  %v3350_v3 = vpop.f32.mrb[41].mxu1  ;;  %2297 = vmatpush1.bf16.msra.mxu1 %v3487_v42  ;;  %v3505_v2 = vld [vmem:[%s4000_s5 + $0x80] ss:$16 sps:$4 sm:$0xff]   ;;  %v3535_v42 = vld [vmem:[%s4459_s21 + $0x8] sm:$0xff]  }
 0x7ec   : > { %v1899_v4 = vpop.f32.mrb[42].mxu1  ;;  %2298 = vmatprep.subr.bf16.mxu1 %v3495_v52  ;;  %v3508_v3 = vld [vmem:[%s4000_s5 + $0x88] ss:$16 sps:$4 sm:$0xff]   ;;  %v3546_v52 = vld [vmem:[%s4459_s21 + $0xe0] sm:$0xff]  }
 0x7ed   : > { %v3351_v5 = vpop.f32.mrb[43].mxu1  ;;  %v3513_v4 = vld [vmem:[%s4000_s5 + $0xa4] ss:$16 sps:$4 sm:$0xff]  }
 0x7ee   : > { %v3516_v5 = vld [vmem:[%s4000_s5 + $0xac] ss:$16 sps:$4 sm:$0xff]  }
 0x7ef   : > { %2299 = vmatpush1.bf16.msra.mxu1 %v3493_v54  ;;  %v3548_v54 = vld [vmem:[%s4459_s21 + $0xa0] sm:$0xff]  }
 0x7f0   : > { %2300 = vmatprep.subr.bf16.mxu1 %v3501_v56  ;;  %v3550_v56 = vld [vmem:[%s4459_s21 + $0xe8] sm:$0xff]  }
 0x7f3   : > { %2301 = vmatpush1.bf16.msra.mxu1 %v3499_v61  ;;  %v3552_v61 = vld [vmem:[%s4459_s21 + $0xa8] sm:$0xff]  }
 0x7f4   : > { %2302 = vmatprep.subr.bf16.mxu1 %v3507_v0  ;;  %v3554_v0 = vld [vmem:[%s4459_s21 + $0xf0] sm:$0xff]  }
 0x7f7   : > { %2303 = vmatpush1.bf16.msra.mxu1 %v3505_v2  ;;  %v3556_v2 = vld [vmem:[%s4459_s21 + $0xb0] sm:$0xff]  }
 0x7f8   : > { %2304 = vmatprep.subr.bf16.mxu1 %v3513_v4  ;;  %v3558_v4 = vld [vmem:[%s4459_s21 + $0xf8] sm:$0xff]  }
 0x84f   : > { %v3433_v6 = vpop.permute.xlu1 %3432 }
 0x850   : > { %v3435_v7 = vunpack.i.h.bf16 %v3433_v6  ;;  %v3434_v9 = vunpack.i.l.bf16 %v3433_v6  ;;  %v3511_v6 = vld [vmem:[%s4000_s5 + $0xa0] ss:$16 sps:$4 sm:$0xff]  }
 0x851   : > { %2305 = vmatpush1.bf16.msra.mxu1 %v3511_v6  ;;  %v3560_v6 = vld [vmem:[%s4459_s21 + $0xb8] sm:$0xff]  }
 0x852   : > { %v1438_v13 = vsel %vm979_vm2, %v4165_v11, %v3435_v7  ;;  %v1914_v15 = vsel %vm979_vm2, %v1563_v44, %v3434_v9  ;;  %v3052_v11 = vld [vmem:[%s4458_s14] ss:$0 sm:$0xff]  ;;  %v3519_v7 = vld [vmem:[%s4000_s5 + $0xc4] ss:$16 sps:$4 sm:$0xff]   ;;  %v3522_v9 = vld [vmem:[%s4000_s5 + $0xcc] ss:$16 sps:$4 sm:$0xff]  }
 0x853   : > { %2306 = vmatprep.subr.bf16.mxu1 %v3519_v7  ;;  %v2128_v7 = vsub.s32 3, %v4088_v58 }
 0x857   : > { %v3438_v8 = vpop.permute.xlu1 %3437 }
 0x858   : > { %v3440_v10 = vunpack.i.h.bf16 %v3438_v8  ;;  %v3439_v12 = vunpack.i.l.bf16 %v3438_v8  ;;  %v3514_v8 = vld [vmem:[%s4000_s5 + $0xa8] ss:$16 sps:$4 sm:$0xff]  }
 0x85a   : > { %v1440_v14 = vsel %vm1439_vm6, %v1438_v13, %v3440_v10  ;;  %v1915_v17 = vsel %vm1439_vm6, %v1914_v15, %v3439_v12  ;;  %v3517_v10 = vld [vmem:[%s4000_s5 + $0xc0] ss:$16 sps:$4 sm:$0xff]   ;;  %v3520_v12 = vld [vmem:[%s4000_s5 + $0xc8] ss:$16 sps:$4 sm:$0xff]   ;;  %v3525_v13 = vld [vmem:[%s4000_s5 + $0xe4] ss:$16 sps:$4 sm:$0xff]  }
 0x85b   : > { %v1436_v16 = vpop.permute.xlu1 %1435  ;;  %v3528_v15 = vld [vmem:[%s4000_s5 + $0xec] ss:$16 sps:$4 sm:$0xff]   ;;  %2307 = vmatpush1.bf16.msra.mxu1 %v3517_v10 }
 0x85c   : > { %v1442_v22 = vsel %vm1441_vm7, %v1440_v14, %v1436_v16  ;;  %v3523_v16 = vld [vmem:[%s4000_s5 + $0xe0] ss:$16 sps:$4 sm:$0xff]   ;;  %v3526_v14 = vld [vmem:[%s4000_s5 + $0xe8] ss:$16 sps:$4 sm:$0xff]   ;;  %2308 = vmatprep.subr.bf16.mxu1 %v3525_v13 }
 0x85d   : > { %v1912_v19 = vpop.permute.xlu0 %1911 }
 0x85e   : > { %v1916_v20 = vsel %vm1441_vm7, %v1915_v17, %v1912_v19 }
 0x85f   : > { %v1918_v21 = vrot.slane %v1916_v20, 3  ;;  %2309 = vmatpush1.bf16.msra.mxu1 %v3523_v16 }
 0x860   : > { %3192 = vmatprep.subr.bf16.mxu1 %v3529_v36 }
 0x861   : > { %v1921_v24 = vsel %vm1920_vm8, %v1442_v22, %v1918_v21 }
 0x862   : > { %v1922_v25 = vpack.c.bf16 %v1918_v21, %v1921_v24 }
 0x864   : > { %3369 = vmatmul.mubr.bf16.vlgmr.msra.gmra.mrb[28].mxu0 %v1922_v25 }
 0x865   : > { %2369 = vmatprep.mubr.bf16.mxu0 %v3742_v34  ;;  %2338 = vmatpush1.bf16.msra.mxu0 %v3484_v38  ;;  %v3531_v38 = vld [vmem:[%s4459_s21] sm:$0xff]  }
 0x866   : > { %2339 = vmatprep.subr.bf16.mxu0 %v3492_v41  ;;  %v3534_v41 = vld [vmem:[%s4459_s21 + $0xc8] sm:$0xff]  }
 0x869   : > { %2340 = vmatpush1.bf16.msra.mxu0 %v3490_v43  ;;  %v3536_v43 = vld [vmem:[%s4459_s21 + $0x88] sm:$0xff]  }
 0x86a   : > { %2341 = vmatprep.subr.bf16.mxu0 %v3498_v53  ;;  %v3547_v53 = vld [vmem:[%s4459_s21 + $0x20] sm:$0xff]  }
 0x86d   : > { %2342 = vmatpush1.bf16.msra.mxu0 %v3496_v55  ;;  %v3549_v55 = vld [vmem:[%s4459_s21 + $0x68] sm:$0xff]  }
 0x86e   : > { %2343 = vmatprep.subr.bf16.mxu0 %v3504_v57  ;;  %v3551_v57 = vld [vmem:[%s4459_s21 + $0x28] sm:$0xff]  }
 0x871   : > { %2344 = vmatpush1.bf16.msra.mxu0 %v3502_v63  ;;  %v3553_v63 = vld [vmem:[%s4459_s21 + $0x70] sm:$0xff]  }
 0x872   : > { %2345 = vmatprep.subr.bf16.mxu0 %v3510_v1  ;;  %v3555_v1 = vld [vmem:[%s4459_s21 + $0x30] sm:$0xff]  }
 0x875   : > { %2346 = vmatpush1.bf16.msra.mxu0 %v3508_v3  ;;  %v3557_v3 = vld [vmem:[%s4459_s21 + $0x78] sm:$0xff]  }
 0x876   : > { %2347 = vmatprep.subr.bf16.mxu0 %v3516_v5  ;;  %v3559_v5 = vld [vmem:[%s4459_s21 + $0x38] sm:$0xff]  }
 0x879   : > { %2348 = vmatpush1.bf16.msra.mxu0 %v3514_v8  ;;  %v2112_v8 = vld [vmem:[%s4006_s20] sm:$0xf] }
 0x87a   : > { %2349 = vmatprep.subr.bf16.mxu0 %v3522_v9  ;;  %v2117_v9 = vrot.slane %v2112_v8, %v751_v59  ;;  %v2125_v10 = vrot.slane %v2112_v8, %v759_v60  ;;  %v2129_v13 = vrot.slane %v2112_v8, %v2128_v7 }
 0x87d   : > { %2350 = vmatpush1.bf16.msra.mxu0 %v3520_v12  ;;  %v2121_v12 = vrot.slane %v2112_v8, %v755_v62 }
 0x87e   : > { %2351 = vmatprep.subr.bf16.mxu0 %v3528_v15 }
 0x881   : > { %2352 = vmatpush1.bf16.msra.mxu0 %v3526_v14 }
 0x882   : > { %3214 = vmatprep.subr.bf16.mxu0 %v3530_v37 }
 0x937   : > { %v2028_v26 = vpop.f32.mrb[28].mxu0 }
 0x938   : > { %v2029_v27 = vadd.f32 %v3052_v11, %v2028_v26  ;;  %v3370_v28 = vpop.f32.mrb[29].mxu0  ;;  %v3061_v26 = vld [vmem:[%s4460_s29] ss:$0 sm:$0xff] }
 0x939   : > { %v2031_v29 = vpop.f32.mrb[30].mxu0 }
 0x93a   : > { %v4277_v23 = vadd.f32 %v3633_v30, %v2029_v27  ;;  %v2032_v31 = vadd.f32 %v3052_v11, %v2031_v29  ;;  %v3371_v34 = vpop.f32.mrb[31].mxu0  ;;  %v3062_v30 = vld [vmem:[%s641_s18] ss:$0 sm:$0xff] }
 0x93c   : > { %v4279_v33 = vadd.f32 %v3634_v32, %v2032_v31  ;;  %2039 = vadd.xlane.f32.xlu1 %v4277_v23 }
 0x93e   : > { %v2041_v35 = vsel %vm674_vm0, %v4279_v33, 0.0 }
 0x93f   : > { %2042 = vadd.xlane.f32.xlu0 %v2041_v35 }
 0x9c9   : > { %v2040_v44 = vpop.xlane.xlu1 %2039 }
 0x9ca   : > { %v2044_v45 = vmul.f32 0.0078125, %v2040_v44  ;;  %v3537_v44 = vld [vmem:[%s4459_s21 + $0x50] sm:$0xff]  }
 0x9cc   : > { %v4293_v46 = vsub.f32 %v4277_v23, %v2044_v45  ;;  %v2043_v47 = vpop.xlane.xlu0 %2042  ;;  %v3538_v45 = vld [vmem:[%s4459_s21 + $0xd0] sm:$0xff]  }
 0x9cd   : > { %v2045_v48 = vmul.f32 0.0078125, %v2043_v47  ;;  %v3540_v47 = vld [vmem:[%s4459_s21 + $0x90] sm:$0xff]  }
 0x9ce   : > { %v2048_v49 = vmul.f32 %v4293_v46, %v4293_v46 }
 0x9cf   : > { %v4298_v50 = vsub.f32 %v4279_v33, %v2045_v48  ;;  %v3541_v48 = vld [vmem:[%s4459_s21 + $0x58] sm:$0xff]  }
 0x9d0   : > { %2050 = vadd.xlane.f32.xlu0 %v2048_v49  ;;  %v3542_v49 = vld [vmem:[%s4459_s21 + $0xd8] sm:$0xff]  }
 0x9d1   : > { %v2049_v18 = vmul.f32 %v4298_v50, %v4298_v50 }
 0x9d3   : > { %v2052_v51 = vsel %vm674_vm0, %v2049_v18, 0.0  ;;  %v3544_v18 = vld [vmem:[%s4459_s21 + $0x98] sm:$0xff]  }
 0x9d4   : > { %2053 = vadd.xlane.f32.xlu0 %v2052_v51  ;;  %v3545_v51 = vld [vmem:[%s4459_s21 + $0x60] sm:$0xff]  }
 0xa5d   : > { %v2051_v17 = vpop.xlane.xlu0 %2050 }
 0xa5e   : > { %v2055_v19 = vmul.f32 0.0078125, %v2051_v17 }
 0xa60   : > { %v2057_v20 = vadd.f32 1e-05, %v2055_v19 }
 0xa61   : > { %v2054_v21 = vpop.xlane.xlu0 %2053 }
 0xa62   : > { %3597 = vrsqrt.f32 %v2057_v20  ;;  %v2056_v22 = vmul.f32 0.0078125, %v2054_v21 }
 0xa64   : > { %v2058_v24 = vadd.f32 1e-05, %v2056_v22 }
 0xa66   : > { %3599 = vrsqrt.f32 %v2058_v24 }
 0xa6c   : > { %v3598_v25 = vpop.eup %3597 }
 0xa6d   : > { %v2061_v11 = vmul.f32 %v3598_v25, %v4293_v46  ;;  %v3539_v46 = vld [vmem:[%s4459_s21 + $0x10] sm:$0xff]  }
 0xa6f   : > { %v2069_v29 = vmul.f32 %v3061_v26, %v2061_v11 }
 0xa70   : > { %v3600_v27 = vpop.eup %3599 }
 0xa71   : > { %v2062_v28 = vmul.f32 %v3600_v27, %v4298_v50  ;;  %v2077_v34 = vadd.f32 %v3062_v30, %v2069_v29  ;;  %v3543_v50 = vld [vmem:[%s4459_s21 + $0x18] sm:$0xff]  }
 0xa73   : > { %v2070_v31 = vmul.f32 %v3061_v26, %v2062_v28 }
 0xa75   : > { %v2078_v32 = vadd.f32 %v3062_v30, %v2070_v31 }
 0xa77   : > { %v2079_v35 = vpack.c.bf16 %v2078_v32, %v2077_v34 }
 0xa79   : > { %2327 = vmatmul.mubr.bf16.vlgmr.msra.gmra.mrb[44].mxu1 %v2079_v35  ;;  %2370 = vmatmul.mubr.bf16.vlgmr.msra.gmra.mrb[32].mxu0 %v2079_v35 }
 0xa7a   : > { %3193 = vmatpush3.bf16.msra.mxu1 %v3531_v38  ;;  %3215 = vmatpush3.bf16.msra.mxu0 %v3532_v39 }
 0xa7b   : > { %3194 = vmatprep.subr.bf16.mxu1 %v3533_v40  ;;  %3216 = vmatprep.subr.bf16.mxu0 %v3534_v41 }
 0xa7e   : > { %3195 = vmatpush3.bf16.msra.mxu1 %v3535_v42  ;;  %3217 = vmatpush3.bf16.msra.mxu0 %v3536_v43 }
 0xa7f   : > { %3196 = vmatprep.subr.bf16.mxu1 %v3537_v44  ;;  %3218 = vmatprep.subr.bf16.mxu0 %v3538_v45 }
 0xa82   : > { %3197 = vmatpush3.bf16.msra.mxu1 %v3539_v46  ;;  %3219 = vmatpush3.bf16.msra.mxu0 %v3540_v47 }
 0xa83   : > { %3198 = vmatprep.subr.bf16.mxu1 %v3541_v48  ;;  %3220 = vmatprep.subr.bf16.mxu0 %v3542_v49 }
 0xa86   : > { %3199 = vmatpush3.bf16.msra.mxu1 %v3543_v50  ;;  %3221 = vmatpush3.bf16.msra.mxu0 %v3544_v18 }
 0xa87   : > { %3200 = vmatprep.subr.bf16.mxu1 %v3545_v51  ;;  %3222 = vmatprep.subr.bf16.mxu0 %v3546_v52 }
 0xa8a   : > { %3201 = vmatpush3.bf16.msra.mxu1 %v3547_v53  ;;  %3223 = vmatpush3.bf16.msra.mxu0 %v3548_v54 }
 0xa8b   : > { %3202 = vmatprep.subr.bf16.mxu1 %v3549_v55  ;;  %3224 = vmatprep.subr.bf16.mxu0 %v3550_v56 }
 0xa8e   : > { %3203 = vmatpush3.bf16.msra.mxu1 %v3551_v57  ;;  %3225 = vmatpush3.bf16.msra.mxu0 %v3552_v61 }
 0xa8f   : > { %3204 = vmatprep.subr.bf16.mxu1 %v3553_v63  ;;  %3226 = vmatprep.subr.bf16.mxu0 %v3554_v0 }
 0xa92   : > { %3205 = vmatpush3.bf16.msra.mxu1 %v3555_v1  ;;  %3227 = vmatpush3.bf16.msra.mxu0 %v3556_v2 }
 0xa93   : > { %3206 = vmatprep.subr.bf16.mxu1 %v3557_v3  ;;  %3228 = vmatprep.subr.bf16.mxu0 %v3558_v4 }
 0xa96   : > { %3207 = vmatpush3.bf16.msra.mxu1 %v3559_v5  ;;  %3229 = vmatpush3.bf16.msra.mxu0 %v3560_v6 }
 0xb4c   : > { %v2328_v15 = vpop.f32.mrb[44].mxu1  ;;  %v2371_v16 = vpop.f32.mrb[32].mxu0 }
 0xb4d   : > { %v4379_v14 = vadd.f32 %v2328_v15, %v2117_v9  ;;  %v4381_v17 = vadd.f32 %v2371_v16, %v2125_v10  ;;  %v2330_v19 = vpop.f32.mrb[45].mxu1  ;;  %v2373_v20 = vpop.f32.mrb[33].mxu0 }
 0xb4e   : > { %v4383_v21 = vadd.f32 %v2330_v19, %v2121_v12  ;;  %v4385_v22 = vadd.f32 %v2373_v20, %v2129_v13  ;;  %v2332_v59 = vpop.f32.mrb[46].mxu1  ;;  %v2375_v24 = vpop.f32.mrb[34].mxu0 }
 0xb4f   : > { %v3095_v60 = vmul.f32 -1.702, %v4379_v14  ;;  %v3097_v58 = vmul.f32 -1.702, %v4381_v17  ;;  %v2333_v62 = vadd.f32 %v2332_v59, %v2117_v9  ;;  %v2376_v25 = vadd.f32 %v2375_v24, %v2125_v10  ;;  %v2334_v11 = vpop.f32.mrb[47].mxu1  ;;  %v2377_v26 = vpop.f32.mrb[35].mxu0 }
 0xb50   : > { %v3096_v27 = vmul.f32 -1.702, %v4383_v21  ;;  %v3098_v28 = vmul.f32 -1.702, %v4385_v22  ;;  %v2335_v29 = vadd.f32 %v2334_v11, %v2121_v12  ;;  %v2378_v30 = vadd.f32 %v2377_v26, %v2129_v13 }
 0xb51   : > { %v2396_v31 = vmul.f32 1.442695, %v3095_v60  ;;  %v2400_v34 = vmul.f32 1.442695, %v3097_v58  ;;  %v3099_v32 = vmul.f32 -1.702, %v2333_v62 }
 0xb52   : > { %v2398_v35 = vmul.f32 1.442695, %v3096_v27  ;;  %v2402_v36 = vmul.f32 1.442695, %v3098_v28  ;;  %v3101_v37 = vmul.f32 -1.702, %v2376_v25 }
 0xb53   : > { %3601 = vpow2.f32 %v2396_v31  ;;  %v2404_v38 = vmul.f32 1.442695, %v3099_v32  ;;  %v3100_v39 = vmul.f32 -1.702, %v2335_v29  ;;  %v3102_v40 = vmul.f32 -1.702, %v2378_v30 }
 0xb54   : > { %3603 = vpow2.f32 %v2400_v34  ;;  %v2408_v41 = vmul.f32 1.442695, %v3101_v37 }
 0xb55   : > { %3605 = vpow2.f32 %v2398_v35  ;;  %v2406_v42 = vmul.f32 1.442695, %v3100_v39  ;;  %v2410_v43 = vmul.f32 1.442695, %v3102_v40 }
 0xb56   : > { %3607 = vpow2.f32 %v2402_v36 }
 0xb57   : > { %3609 = vpow2.f32 %v2404_v38 }
 0xb58   : > { %3611 = vpow2.f32 %v2408_v41 }
 0xb59   : > { %3613 = vpow2.f32 %v2406_v42 }
 0xb5a   : > { %3615 = vpow2.f32 %v2410_v43 }
 0xb5d   : > { %v3602_v44 = vpop.eup %3601 }
 0xb5e   : > { %v3604_v45 = vpop.eup %3603  ;;  %v2412_v46 = vadd.f32 1.0, %v3602_v44 }
 0xb5f   : > { %v3606_v47 = vpop.eup %3605  ;;  %v2414_v48 = vadd.f32 1.0, %v3604_v45 }
 0xb60   : > { %v3608_v49 = vpop.eup %3607  ;;  %3617 = vrcp.f32 %v2412_v46  ;;  %v2413_v50 = vadd.f32 1.0, %v3606_v47 }
 0xb61   : > { %v3610_v18 = vpop.eup %3609  ;;  %3619 = vrcp.f32 %v2414_v48  ;;  %v2415_v51 = vadd.f32 1.0, %v3608_v49 }
 0xb62   : > { %v3612_v52 = vpop.eup %3611  ;;  %3621 = vrcp.f32 %v2413_v50  ;;  %v2416_v53 = vadd.f32 1.0, %v3610_v18 }
 0xb63   : > { %v3614_v54 = vpop.eup %3613  ;;  %3623 = vrcp.f32 %v2415_v51  ;;  %v2418_v55 = vadd.f32 1.0, %v3612_v52 }
 0xb64   : > { %v3616_v56 = vpop.eup %3615  ;;  %3625 = vrcp.f32 %v2416_v53  ;;  %v2417_v57 = vadd.f32 1.0, %v3614_v54 }
 0xb65   : > { %3627 = vrcp.f32 %v2418_v55  ;;  %v2419_v61 = vadd.f32 1.0, %v3616_v56 }
 0xb66   : > { %3629 = vrcp.f32 %v2417_v57 }
 0xb67   : > { %3631 = vrcp.f32 %v2419_v61 }
 0xb6a   : > { %v3618_v63 = vpop.eup %3617 }
 0xb6b   : > { %v3620_v0 = vpop.eup %3619  ;;  %v2436_v5 = vmul.f32 %v3618_v63, %v4379_v14 }
 0xb6c   : > { %v3622_v1 = vpop.eup %3621  ;;  %v2438_v7 = vmul.f32 %v3620_v0, %v4381_v17 }
 0xb6d   : > { %v3624_v2 = vpop.eup %3623  ;;  %v2437_v12 = vmul.f32 %v3622_v1, %v4383_v21 }
 0xb6e   : > { %v3626_v3 = vpop.eup %3625  ;;  %v2439_v16 = vmul.f32 %v3624_v2, %v4385_v22 }
 0xb6f   : > { %v3628_v4 = vpop.eup %3627  ;;  %v2440_v6 = vmul.f32 %v3626_v3, %v2333_v62 }
 0xb70   : > { %v3630_v8 = vpop.eup %3629  ;;  %v2442_v9 = vmul.f32 %v3628_v4, %v2376_v25 }
 0xb71   : > { %v3632_v10 = vpop.eup %3631  ;;  %v2444_v13 = vpack.c.bf16 %v2440_v6, %v2436_v5  ;;  %v2441_v15 = vmul.f32 %v3630_v8, %v2335_v29 }
 0xb72   : > { %v2446_v19 = vpack.c.bf16 %v2442_v9, %v2438_v7  ;;  %v2443_v20 = vmul.f32 %v3632_v10, %v2378_v30  ;;  %v3135_v30 = vld [vmem:[%s653_s26] ss:$0 sm:$0xff] }
 0xb73   : > { %v2445_v59 = vpack.c.bf16 %v2441_v15, %v2437_v12 }
 0xb74   : > { %v2447_v24 = vpack.c.bf16 %v2443_v20, %v2439_v16 }
 0xb75   : > { %2736 = vmatprep.mubr.bf16.mxu1 %v2445_v59 }
 0xb76   : > { %2777 = vmatprep.mubr.bf16.mxu0 %v2447_v24  ;;  %2737 = vmatmul.mubr.bf16.vlgmr.msra.gmra.mrb[48].mxu1 %v2444_v13 }
 0xb77   : > { %2778 = vmatmul.mubr.bf16.vlgmr.msra.gmra.mrb[36].mxu0 %v2446_v19 }
 0xc49   : > { %v3208_v14 = vpop.f32.mrb[48].mxu1 }
 0xc4a   : > { %v3230_v60 = vpop.f32.mrb[36].mxu0  ;;  %v3209_v17 = vpop.f32.mrb[49].mxu1 }
 0xc4b   : > { %v3210_v58 = vadd.f32 %v3209_v17, %v3208_v14  ;;  %v3231_v62 = vpop.f32.mrb[37].mxu0  ;;  %v3211_v21 = vpop.f32.mrb[50].mxu1 }
 0xc4c   : > { %v3232_v25 = vadd.f32 %v3231_v62, %v3230_v60  ;;  %v3233_v11 = vpop.f32.mrb[38].mxu0  ;;  %v3212_v22 = vpop.f32.mrb[51].mxu1 }
 0xc4d   : > { %v3213_v26 = vadd.f32 %v3212_v22, %v3211_v21  ;;  %v3234_v27 = vpop.f32.mrb[39].mxu0 }
 0xc4e   : > { %v2780_v28 = vadd.f32 %v3232_v25, %v3210_v58  ;;  %v3235_v29 = vadd.f32 %v3234_v27, %v3233_v11 }
 0xc50   : > { %v2786_v31 = vadd.f32 %v2780_v28, %v4277_v23  ;;  %v2783_v34 = vadd.f32 %v3235_v29, %v3213_v26 }
 0xc52   : > { %v2795_v32 = vadd.f32 %v3135_v30, %v2786_v31  ;;  %v2787_v35 = vadd.f32 %v2783_v34, %v4279_v33 }
 0xc54   : > { %2797 = vst [vmem:[#allocation2] sm:$0xff] %v2795_v32  ;;  %2799 = vst [vmem:[%s4016_s22] sm:$0xff] %v2795_v32  ;;  %v2796_v36 = vadd.f32 %v3135_v30, %v2787_v35 }
 0xc56   : > { %2798 = vst [vmem:[#allocation2 + $0x8] sm:$0x3] %v2796_v36  ;;  %2800 = vst [vmem:[%s4016_s22 + $0x8] sm:$0x3] %v2796_v36 }
 0xc57 PF: > { %s4461_s28 = sld [smem:[#allocation11_spill]]  ;;  %s4462_s25 = sld [smem:[#allocation9_spill]] }
 0xc58   : > { %s4463_s26 = sld [smem:[#allocation10_spill]]  ;;  %s4464_s27 = sld [smem:[#allocation12_spill]] }
 0xc5d   : > { %p26_p3 = scmp.ge.s32.totalorder %s4461_s28, 5  }
 0xc5f   :  { %28 = sbr.rel (!%p26_p3) target bundleno = 10 (0xa), region = 159 }
 0xc66   :  { %2822 = vsyncpa [#allocation4], 1 }
 0xc67   :  { %2824 = vsyncpa [#allocation4 + $0x1], 1 }
 0xc68   :  { %2825 = vsyncpa [#allocation6], 1 }
 0xc69   :  { %2827 = vsyncpa [#allocation6 + $0x1], 1 }

</bundles_post_ra>
